<compile_context>
chip_gen: v5e
topology: v5e:2x2
jax: 0.10.0
libtpu: 0.0.40
codegen_flags: <defaults>
</compile_context>

<pallas_src>
import functools

import jax
import jax.numpy as jnp
from jax.experimental import pallas as pl
from jax.experimental.pallas import tpu as pltpu

# ---- toy configuration (consistent with the module's shape conventions) ----
BATCH = 2
SEQ = 16
HIDDEN = 32            # config.hidden_size
INTERMEDIATE = 64      # config.intermediate_size
NUM_HEADS = 4          # config.num_attention_heads
HEAD_DIM = HIDDEN // NUM_HEADS
EPS = 1e-6             # config.layer_norm_eps
LANES = 128            # lane-tile width

# rows of the packed (16, 128) small-parameter slab
_R_LN1_G, _R_LN1_B, _R_LN2_G, _R_LN2_B = 0, 1, 2, 3
_R_BQ, _R_BK, _R_BV, _R_BO, _R_B1, _R_B2 = 4, 5, 6, 7, 8, 9
_SLAB_ROWS = 16


def _layer_norm(h, gamma, beta):
    mu = jnp.mean(h, axis=-1, keepdims=True)
    var = jnp.mean((h - mu) ** 2, axis=-1, keepdims=True)
    return (h - mu) * jax.lax.rsqrt(var + EPS) * gamma + beta


def _gelu_tanh(x):
    # nn.functional.gelu(x, approximate='tanh'), computed in f32
    c = jnp.float32(0.7978845608028654)   # sqrt(2/pi)
    return 0.5 * x * (1.0 + jnp.tanh(c * (x + 0.044715 * x * x * x)))


def encoder_layer_kernel(x_ref, wqkv_ref, wo_ref, w1_ref, w2_ref, pv_ref, o_ref,
                         *, seq_len, num_heads, approx_recip):
    M, D = x_ref.shape                 # M = rows in this block (Bb * S)
    I = w1_ref.shape[1]
    S = seq_len
    H = num_heads
    Hd = D // H
    Bb = M // S
    bf16 = jnp.bfloat16

    # ---- unpack the single lane-dense (16, 128) f32 small-parameter slab ----
    pv = pv_ref[...]
    ln1_g = pv[_R_LN1_G:_R_LN1_G + 1, :D]
    ln1_b = pv[_R_LN1_B:_R_LN1_B + 1, :D]
    ln2_g = pv[_R_LN2_G:_R_LN2_G + 1, :D]
    ln2_b = pv[_R_LN2_B:_R_LN2_B + 1, :D]
    bq = pv[_R_BQ:_R_BQ + 1, :D]       # Q bias already scaled by head_dim**-0.5
    bk = pv[_R_BK:_R_BK + 1, :D]
    bv = pv[_R_BV:_R_BV + 1, :D]
    bo = pv[_R_BO:_R_BO + 1, :D]
    b1 = pv[_R_B1:_R_B1 + 1, :I]
    b2 = pv[_R_B2:_R_B2 + 1, :D]

    # ---- load the flattened (M, D) activation block directly ----
    x = x_ref[...]

    # ---- layer_norm1 + fused QKV projection (one bf16 MXU matmul) ----
    h = _layer_norm(x, ln1_g, ln1_b)
    qkv = jnp.dot(h.astype(bf16), wqkv_ref[...],
                  preferred_element_type=jnp.float32)         # (M, 3*128) f32
    # q / k / v each live in their own 128-lane tile -> tile-aligned slices
    q = qkv[:, 0:D] + bq
    k = qkv[:, LANES:LANES + D] + bk
    v = qkv[:, 2 * LANES:2 * LANES + D] + bv

    # ---- head split, batched over G = Bb*H in one leading dim ----
    def heads(m2d):                    # (M, D) -> (G, S, Hd)
        return jnp.stack(
            [m2d[b * S:(b + 1) * S, hh * Hd:(hh + 1) * Hd]
             for b in range(Bb) for hh in range(H)], axis=0)

    def heads_T(m2d):                  # (M, D) -> (G, Hd, S), sublane slicing only
        blocks = []
        for b in range(Bb):
            mbT = m2d[b * S:(b + 1) * S, :].T                 # (D, S)
            blocks.extend(mbT[hh * Hd:(hh + 1) * Hd, :] for hh in range(H))
        return jnp.stack(blocks, axis=0)

    qh = heads(q)        # (G, S, Hd)
    khT = heads_T(k)     # (G, Hd, S)
    vhT = heads_T(v)     # (G, Hd, S)

    # ---- attention: one scores einsum + one PV einsum for the whole block ----
    s = jnp.einsum("gqd,gdk->gqk", qh.astype(bf16), khT.astype(bf16),
                   preferred_element_type=jnp.float32)        # (G, S, S) f32
    s = s - jnp.max(s, axis=-1, keepdims=True)
    p = jnp.exp(s)
    l = jnp.sum(p, axis=-1)                                   # (G, S) f32
    # PV on un-normalized probabilities; output already in (Hd, S) layout.
    ohT = jnp.einsum("gdk,gqk->gdq", vhT.astype(bf16), p.astype(bf16),
                     preferred_element_type=jnp.float32)      # (G, Hd, S)
    # deferred softmax normalization (approx reciprocal on the EUP by default)
    inv_l = pl.reciprocal(l, approx=True) if approx_recip else 1.0 / l
    ohT = ohT * inv_l[:, None, :]

    # ---- back to (M, D): sublane concat in transposed space + small transposes ----
    rows = []
    for b in range(Bb):
        obT = jnp.concatenate([ohT[b * H + hh] for hh in range(H)], axis=0)  # (D, S)
        rows.append(obT.T)                                                   # (S, D)
    attn = rows[0] if Bb == 1 else jnp.concatenate(rows, axis=0)             # (M, D)

    attn = jnp.dot(attn.astype(bf16), wo_ref[...],
                   preferred_element_type=jnp.float32) + bo   # (M, D)

    # ---- residual 1 ----
    x1 = x + attn

    # ---- layer_norm2 + MLP (gelu tanh) ----
    hm = _layer_norm(x1, ln2_g, ln2_b)
    h1 = jnp.dot(hm.astype(bf16), w1_ref[...],
                 preferred_element_type=jnp.float32) + b1
    h1 = _gelu_tanh(h1)
    y = jnp.dot(h1.astype(bf16), w2_ref[...],
                preferred_element_type=jnp.float32) + b2

    # ---- residual 2 + single contiguous store ----
    o_ref[...] = (x1 + y).astype(o_ref.dtype)


# ------------------------------ wrapper -------------------------------------
def _pad_row(v, width=LANES):
    v = jnp.asarray(v, jnp.float32).reshape(1, -1)
    return jnp.pad(v, ((0, 0), (0, width - v.shape[1])))


def _pad_cols(w, width=LANES):
    return jnp.pad(w, ((0, 0), (0, width - w.shape[1])))


def pack_params(params, num_heads):
    """Fuse QKV weights (scale folded into Q, each projection padded to its own
    128-lane tile) and pack all small vectors into one (16, 128) f32 slab.
    Weights are pre-cast to bf16 for the MXU."""
    D = params["wq"].shape[0]
    I = params["w1"].shape[1]
    head_dim = D // num_heads
    scale = head_dim ** -0.5
    assert D <= LANES and I <= LANES, "toy-size packing; retile for real SigLIP"

    wqkv = jnp.concatenate(
        [_pad_cols(params["wq"] * scale), _pad_cols(params["wk"]),
         _pad_cols(params["wv"])], axis=1).astype(jnp.bfloat16)   # (D, 3*128)
    wo = params["wo"].astype(jnp.bfloat16)                        # (D, D)
    w1 = params["w1"].astype(jnp.bfloat16)                        # (D, I)
    w2 = params["w2"].astype(jnp.bfloat16)                        # (I, D)

    rows = [params["ln1_g"], params["ln1_b"], params["ln2_g"], params["ln2_b"],
            params["bq"] * scale, params["bk"], params["bv"], params["bo"],
            params["b1"], params["b2"]]
    slab = jnp.concatenate(
        [_pad_row(r) for r in rows]
        + [jnp.zeros((_SLAB_ROWS - len(rows), LANES), jnp.float32)],
        axis=0)                                                   # (16, 128)
    return wqkv, wo, w1, w2, slab


def siglip_encoder_layer(x, params, *, num_heads=NUM_HEADS, batch_block=None,
                         approx_softmax_recip=True):
    """x: (B, S, D) f32.  params: dict of f32 weights laid out (in, out).

    batch_block=None (default) processes the whole flattened (B*S, D) block in
    ONE grid step; at these toy sizes this is best on v5e/v6e AND v7x (per-step
    work is far below the ~0.35 us grid-step overhead).  Only shard the batch
    grid (batch_block < B) once the per-step compute grows to real SigLIP
    sizes.  approx_softmax_recip=True uses pl.reciprocal(approx=True) for the
    softmax denominator (EUP slot; ~1e-3 relative error, inside the bf16
    tolerance); set False for the exact divide."""
    B, S, D = x.shape
    if batch_block is None:
        batch_block = B
    assert B % batch_block == 0
    wqkv, wo, w1, w2, slab = pack_params(params, num_heads)
    I = w1.shape[1]
    rows = batch_block * S

    kernel = functools.partial(encoder_layer_kernel, seq_len=S,
                               num_heads=num_heads,
                               approx_recip=approx_softmax_recip)
    x2d = x.reshape(B * S, D)          # free, contiguous reshape in the wrapper
    out2d = pl.pallas_call(
        kernel,
        out_shape=jax.ShapeDtypeStruct((B * S, D), x.dtype),
        grid_spec=pltpu.PrefetchScalarGridSpec(
            num_scalar_prefetch=0,
            grid=(B // batch_block,),
            in_specs=[
                pl.BlockSpec((rows, D), lambda g: (g, 0)),           # x (flat)
                pl.BlockSpec((D, 3 * LANES), lambda g: (0, 0)),      # wqkv
                pl.BlockSpec((D, D), lambda g: (0, 0)),              # wo
                pl.BlockSpec((D, I), lambda g: (0, 0)),              # w1
                pl.BlockSpec((I, D), lambda g: (0, 0)),              # w2
                pl.BlockSpec((_SLAB_ROWS, LANES), lambda g: (0, 0)), # param slab
            ],
            out_specs=pl.BlockSpec((rows, D), lambda g: (g, 0)),
        ),
        compiler_params=pltpu.CompilerParams(
            dimension_semantics=("parallel",)),
    )(x2d, wqkv, wo, w1, w2, slab)
    return out2d.reshape(B, S, D)


# ---------------- pure-JAX reference (mirrors the PyTorch forward) ----------------
def reference_forward(x, p):
    def ln(h, g, b):
        mu = jnp.mean(h, axis=-1, keepdims=True)
        var = jnp.mean((h - mu) ** 2, axis=-1, keepdims=True)
        return (h - mu) / jnp.sqrt(var + EPS) * g[0] + b[0]

    residual = x
    h = ln(x, p["ln1_g"], p["ln1_b"])
    q = h @ p["wq"] + p["bq"][0]
    k = h @ p["wk"] + p["bk"][0]
    v = h @ p["wv"] + p["bv"][0]
    B, S, D = x.shape

    def split(t):
        return t.reshape(B, S, NUM_HEADS, HEAD_DIM).transpose(0, 2, 1, 3)

    qh, kh, vh = split(q), split(k), split(v)
    s = jnp.einsum("bhqd,bhkd->bhqk", qh, kh) * (HEAD_DIM ** -0.5)
    pr = jax.nn.softmax(s, axis=-1)
    a = jnp.einsum("bhqk,bhkd->bhqd", pr, vh).transpose(0, 2, 1, 3).reshape(B, S, D)
    a = a @ p["wo"] + p["bo"][0]
    x = residual + a

    residual = x
    h = ln(x, p["ln2_g"], p["ln2_b"])
    h1 = h @ p["w1"] + p["b1"][0]
    c = jnp.sqrt(2.0 / jnp.pi)
    h1 = 0.5 * h1 * (1.0 + jnp.tanh(c * (h1 + 0.044715 * h1 ** 3)))
    h2 = h1 @ p["w2"] + p["b2"][0]
    return residual + h2


def make_params(key):
    ks = jax.random.split(key, 16)
    D, I = HIDDEN, INTERMEDIATE
    scale = 0.02

    def w(k, shape):
        return scale * jax.random.normal(k, shape, dtype=jnp.float32)

    return {
        "ln1_g": jnp.ones((1, D), jnp.float32),
        "ln1_b": jnp.zeros((1, D), jnp.float32),
        "wq": w(ks[0], (D, D)), "bq": w(ks[1], (1, D)),
        "wk": w(ks[2], (D, D)), "bk": w(ks[3], (1, D)),
        "wv": w(ks[4], (D, D)), "bv": w(ks[5], (1, D)),
        "wo": w(ks[6], (D, D)), "bo": w(ks[7], (1, D)),
        "ln2_g": jnp.ones((1, D), jnp.float32),
        "ln2_b": jnp.zeros((1, D), jnp.float32),
        "w1": w(ks[8], (D, I)), "b1": w(ks[9], (1, I)),
        "w2": w(ks[10], (I, D)), "b2": w(ks[11], (1, D)),
    }


if __name__ == "__main__":
    key = jax.random.PRNGKey(0)
    k_x, k_p = jax.random.split(key)
    x = jax.random.normal(k_x, (BATCH, SEQ, HIDDEN), dtype=jnp.float32)
    params = make_params(k_p)

    out = jax.block_until_ready(siglip_encoder_layer(x, params))
    ref = reference_forward(x, params)

    assert out.shape == (BATCH, SEQ, HIDDEN)
    err = float(jnp.max(jnp.abs(out - ref)))
    # bf16 MXU inputs + approx softmax reciprocal -> 1e-2 tolerance
    assert err < 1e-2, err

    print("KERNEL_OK")
</pallas_src>

<mosaic_0001>
module attributes {stable_mosaic.version = 11 : i64} {
  func.func @encoder_layer_kernel(%arg0: i32, %arg1: memref<32x32xf32, #tpu.memory_space<vmem>>, %arg2: memref<32x384xbf16, #tpu.memory_space<vmem>>, %arg3: memref<32x32xbf16, #tpu.memory_space<vmem>>, %arg4: memref<32x64xbf16, #tpu.memory_space<vmem>>, %arg5: memref<64x32xbf16, #tpu.memory_space<vmem>>, %arg6: memref<16x128xf32, #tpu.memory_space<vmem>>, %arg7: memref<32x32xf32, #tpu.memory_space<vmem>>) attributes {dimension_semantics = [#tpu.dimension_semantics<parallel>], iteration_bounds = array<i64: 1>, scalar_prefetch = 0 : i64, scratch_operands = 0 : i64, tpu.core_type = #tpu.core_type<tc>, window_params = [{transform_indices = @transform_0, window_bounds = array<i64: 32, 32>}, {pipeline_mode = #tpu.pipeline_mode<synchronous>, transform_indices = @transform_1, window_bounds = array<i64: 32, 384>}, {pipeline_mode = #tpu.pipeline_mode<synchronous>, transform_indices = @transform_2, window_bounds = array<i64: 32, 32>}, {pipeline_mode = #tpu.pipeline_mode<synchronous>, transform_indices = @transform_3, window_bounds = array<i64: 32, 64>}, {pipeline_mode = #tpu.pipeline_mode<synchronous>, transform_indices = @transform_4, window_bounds = array<i64: 64, 32>}, {pipeline_mode = #tpu.pipeline_mode<synchronous>, transform_indices = @transform_5, window_bounds = array<i64: 16, 128>}, {transform_indices = @transform_6, window_bounds = array<i64: 32, 32>}]} {
    %c0 = arith.constant 0 : index
    %c0_0 = arith.constant 0 : index
    %0 = vector.load %arg6[%c0, %c0_0] : memref<16x128xf32, #tpu.memory_space<vmem>>, vector<16x128xf32>
    %1 = vector.extract_strided_slice %0 {offsets = [0, 0], sizes = [1, 32], strides = [1, 1]} : vector<16x128xf32> to vector<1x32xf32>
    %2 = vector.extract_strided_slice %0 {offsets = [1, 0], sizes = [1, 32], strides = [1, 1]} : vector<16x128xf32> to vector<1x32xf32>
    %3 = vector.extract_strided_slice %0 {offsets = [2, 0], sizes = [1, 32], strides = [1, 1]} : vector<16x128xf32> to vector<1x32xf32>
    %4 = vector.extract_strided_slice %0 {offsets = [3, 0], sizes = [1, 32], strides = [1, 1]} : vector<16x128xf32> to vector<1x32xf32>
    %5 = vector.extract_strided_slice %0 {offsets = [4, 0], sizes = [1, 32], strides = [1, 1]} : vector<16x128xf32> to vector<1x32xf32>
    %6 = vector.extract_strided_slice %0 {offsets = [5, 0], sizes = [1, 32], strides = [1, 1]} : vector<16x128xf32> to vector<1x32xf32>
    %7 = vector.extract_strided_slice %0 {offsets = [6, 0], sizes = [1, 32], strides = [1, 1]} : vector<16x128xf32> to vector<1x32xf32>
    %8 = vector.extract_strided_slice %0 {offsets = [7, 0], sizes = [1, 32], strides = [1, 1]} : vector<16x128xf32> to vector<1x32xf32>
    %9 = vector.extract_strided_slice %0 {offsets = [8, 0], sizes = [1, 64], strides = [1, 1]} : vector<16x128xf32> to vector<1x64xf32>
    %10 = vector.extract_strided_slice %0 {offsets = [9, 0], sizes = [1, 32], strides = [1, 1]} : vector<16x128xf32> to vector<1x32xf32>
    %c0_1 = arith.constant 0 : index
    %c0_2 = arith.constant 0 : index
    %11 = vector.load %arg1[%c0_1, %c0_2] : memref<32x32xf32, #tpu.memory_space<vmem>>, vector<32x32xf32>
    %cst = arith.constant dense<0.000000e+00> : vector<32xf32>
    %12 = vector.multi_reduction <add>, %11, %cst [1] : vector<32x32xf32> to vector<32xf32>
    %13 = vector.shape_cast %12 : vector<32xf32> to vector<32x1xf32>
    %cst_3 = arith.constant 3.200000e+01 : f32
    %14 = vector.broadcast %cst_3 : f32 to vector<32x1xf32>
    %15 = arith.divf %13, %14 : vector<32x1xf32>
    %16 = vector.broadcast %15 : vector<32x1xf32> to vector<32x32xf32>
    %17 = arith.subf %11, %16 : vector<32x32xf32>
    %18 = arith.mulf %17, %17 : vector<32x32xf32>
    %cst_4 = arith.constant dense<0.000000e+00> : vector<32xf32>
    %19 = vector.multi_reduction <add>, %18, %cst_4 [1] : vector<32x32xf32> to vector<32xf32>
    %20 = vector.shape_cast %19 : vector<32xf32> to vector<32x1xf32>
    %cst_5 = arith.constant 3.200000e+01 : f32
    %21 = vector.broadcast %cst_5 : f32 to vector<32x1xf32>
    %22 = arith.divf %20, %21 : vector<32x1xf32>
    %23 = vector.broadcast %15 : vector<32x1xf32> to vector<32x32xf32>
    %24 = arith.subf %11, %23 : vector<32x32xf32>
    %cst_6 = arith.constant 9.99999997E-7 : f32
    %25 = vector.broadcast %cst_6 : f32 to vector<32x1xf32>
    %26 = arith.addf %22, %25 : vector<32x1xf32>
    %27 = math.rsqrt %26 : vector<32x1xf32>
    %28 = vector.broadcast %27 : vector<32x1xf32> to vector<32x32xf32>
    %29 = arith.mulf %24, %28 : vector<32x32xf32>
    %30 = vector.broadcast %1 : vector<1x32xf32> to vector<32x32xf32>
    %31 = arith.mulf %29, %30 : vector<32x32xf32>
    %32 = vector.broadcast %2 : vector<1x32xf32> to vector<32x32xf32>
    %33 = arith.addf %31, %32 : vector<32x32xf32>
    %34 = arith.truncf %33 : vector<32x32xf32> to vector<32x32xbf16>
    %c0_7 = arith.constant 0 : index
    %c0_8 = arith.constant 0 : index
    %35 = vector.load %arg2[%c0_7, %c0_8] : memref<32x384xbf16, #tpu.memory_space<vmem>>, vector<32x384xbf16>
    %cst_9 = arith.constant dense<0.000000e+00> : vector<32x384xf32>
    %36 = tpu.matmul %34, %35, %cst_9 {dimension_numbers = #tpu.dot_dimension_numbers<[1], [0], [0], [1], [0, 0, 1, 1], [], []>} : vector<32x32xbf16>, vector<32x384xbf16>, vector<32x384xf32> -> vector<32x384xf32>
    %37 = vector.extract_strided_slice %36 {offsets = [0, 0], sizes = [32, 32], strides = [1, 1]} : vector<32x384xf32> to vector<32x32xf32>
    %38 = vector.broadcast %5 : vector<1x32xf32> to vector<32x32xf32>
    %39 = arith.addf %37, %38 : vector<32x32xf32>
    %40 = vector.extract_strided_slice %36 {offsets = [0, 128], sizes = [32, 32], strides = [1, 1]} : vector<32x384xf32> to vector<32x32xf32>
    %41 = vector.broadcast %6 : vector<1x32xf32> to vector<32x32xf32>
    %42 = arith.addf %40, %41 : vector<32x32xf32>
    %43 = vector.extract_strided_slice %36 {offsets = [0, 256], sizes = [32, 32], strides = [1, 1]} : vector<32x384xf32> to vector<32x32xf32>
    %44 = vector.broadcast %7 : vector<1x32xf32> to vector<32x32xf32>
    %45 = arith.addf %43, %44 : vector<32x32xf32>
    %46 = vector.extract_strided_slice %39 {offsets = [0, 0], sizes = [16, 8], strides = [1, 1]} : vector<32x32xf32> to vector<16x8xf32>
    %47 = vector.extract_strided_slice %39 {offsets = [0, 8], sizes = [16, 8], strides = [1, 1]} : vector<32x32xf32> to vector<16x8xf32>
    %48 = vector.extract_strided_slice %39 {offsets = [0, 16], sizes = [16, 8], strides = [1, 1]} : vector<32x32xf32> to vector<16x8xf32>
    %49 = vector.extract_strided_slice %39 {offsets = [0, 24], sizes = [16, 8], strides = [1, 1]} : vector<32x32xf32> to vector<16x8xf32>
    %50 = vector.extract_strided_slice %39 {offsets = [16, 0], sizes = [16, 8], strides = [1, 1]} : vector<32x32xf32> to vector<16x8xf32>
    %51 = vector.extract_strided_slice %39 {offsets = [16, 8], sizes = [16, 8], strides = [1, 1]} : vector<32x32xf32> to vector<16x8xf32>
    %52 = vector.extract_strided_slice %39 {offsets = [16, 16], sizes = [16, 8], strides = [1, 1]} : vector<32x32xf32> to vector<16x8xf32>
    %53 = vector.extract_strided_slice %39 {offsets = [16, 24], sizes = [16, 8], strides = [1, 1]} : vector<32x32xf32> to vector<16x8xf32>
    %54 = vector.shape_cast %46 : vector<16x8xf32> to vector<1x16x8xf32>
    %55 = vector.shape_cast %47 : vector<16x8xf32> to vector<1x16x8xf32>
    %56 = vector.shape_cast %48 : vector<16x8xf32> to vector<1x16x8xf32>
    %57 = vector.shape_cast %49 : vector<16x8xf32> to vector<1x16x8xf32>
    %58 = vector.shape_cast %50 : vector<16x8xf32> to vector<1x16x8xf32>
    %59 = vector.shape_cast %51 : vector<16x8xf32> to vector<1x16x8xf32>
    %60 = vector.shape_cast %52 : vector<16x8xf32> to vector<1x16x8xf32>
    %61 = vector.shape_cast %53 : vector<16x8xf32> to vector<1x16x8xf32>
    %62 = tpu.concatenate %54, %55, %56, %57, %58, %59, %60, %61 in 0 : vector<1x16x8xf32>, vector<1x16x8xf32>, vector<1x16x8xf32>, vector<1x16x8xf32>, vector<1x16x8xf32>, vector<1x16x8xf32>, vector<1x16x8xf32>, vector<1x16x8xf32> -> vector<8x16x8xf32>
    %63 = vector.extract_strided_slice %42 {offsets = [0, 0], sizes = [16, 32], strides = [1, 1]} : vector<32x32xf32> to vector<16x32xf32>
    %64 = tpu.transpose %63, [1, 0] : vector<16x32xf32> -> vector<32x16xf32>
    %65 = vector.extract_strided_slice %64 {offsets = [0, 0], sizes = [8, 16], strides = [1, 1]} : vector<32x16xf32> to vector<8x16xf32>
    %66 = vector.extract_strided_slice %64 {offsets = [8, 0], sizes = [8, 16], strides = [1, 1]} : vector<32x16xf32> to vector<8x16xf32>
    %67 = vector.extract_strided_slice %64 {offsets = [16, 0], sizes = [8, 16], strides = [1, 1]} : vector<32x16xf32> to vector<8x16xf32>
    %68 = vector.extract_strided_slice %64 {offsets = [24, 0], sizes = [8, 16], strides = [1, 1]} : vector<32x16xf32> to vector<8x16xf32>
    %69 = vector.extract_strided_slice %42 {offsets = [16, 0], sizes = [16, 32], strides = [1, 1]} : vector<32x32xf32> to vector<16x32xf32>
    %70 = tpu.transpose %69, [1, 0] : vector<16x32xf32> -> vector<32x16xf32>
    %71 = vector.extract_strided_slice %70 {offsets = [0, 0], sizes = [8, 16], strides = [1, 1]} : vector<32x16xf32> to vector<8x16xf32>
    %72 = vector.extract_strided_slice %70 {offsets = [8, 0], sizes = [8, 16], strides = [1, 1]} : vector<32x16xf32> to vector<8x16xf32>
    %73 = vector.extract_strided_slice %70 {offsets = [16, 0], sizes = [8, 16], strides = [1, 1]} : vector<32x16xf32> to vector<8x16xf32>
    %74 = vector.extract_strided_slice %70 {offsets = [24, 0], sizes = [8, 16], strides = [1, 1]} : vector<32x16xf32> to vector<8x16xf32>
    %75 = vector.shape_cast %65 : vector<8x16xf32> to vector<1x8x16xf32>
    %76 = vector.shape_cast %66 : vector<8x16xf32> to vector<1x8x16xf32>
    %77 = vector.shape_cast %67 : vector<8x16xf32> to vector<1x8x16xf32>
    %78 = vector.shape_cast %68 : vector<8x16xf32> to vector<1x8x16xf32>
    %79 = vector.shape_cast %71 : vector<8x16xf32> to vector<1x8x16xf32>
    %80 = vector.shape_cast %72 : vector<8x16xf32> to vector<1x8x16xf32>
    %81 = vector.shape_cast %73 : vector<8x16xf32> to vector<1x8x16xf32>
    %82 = vector.shape_cast %74 : vector<8x16xf32> to vector<1x8x16xf32>
    %83 = tpu.concatenate %75, %76, %77, %78, %79, %80, %81, %82 in 0 : vector<1x8x16xf32>, vector<1x8x16xf32>, vector<1x8x16xf32>, vector<1x8x16xf32>, vector<1x8x16xf32>, vector<1x8x16xf32>, vector<1x8x16xf32>, vector<1x8x16xf32> -> vector<8x8x16xf32>
    %84 = vector.extract_strided_slice %45 {offsets = [0, 0], sizes = [16, 32], strides = [1, 1]} : vector<32x32xf32> to vector<16x32xf32>
    %85 = tpu.transpose %84, [1, 0] : vector<16x32xf32> -> vector<32x16xf32>
    %86 = vector.extract_strided_slice %85 {offsets = [0, 0], sizes = [8, 16], strides = [1, 1]} : vector<32x16xf32> to vector<8x16xf32>
    %87 = vector.extract_strided_slice %85 {offsets = [8, 0], sizes = [8, 16], strides = [1, 1]} : vector<32x16xf32> to vector<8x16xf32>
    %88 = vector.extract_strided_slice %85 {offsets = [16, 0], sizes = [8, 16], strides = [1, 1]} : vector<32x16xf32> to vector<8x16xf32>
    %89 = vector.extract_strided_slice %85 {offsets = [24, 0], sizes = [8, 16], strides = [1, 1]} : vector<32x16xf32> to vector<8x16xf32>
    %90 = vector.extract_strided_slice %45 {offsets = [16, 0], sizes = [16, 32], strides = [1, 1]} : vector<32x32xf32> to vector<16x32xf32>
    %91 = tpu.transpose %90, [1, 0] : vector<16x32xf32> -> vector<32x16xf32>
    %92 = vector.extract_strided_slice %91 {offsets = [0, 0], sizes = [8, 16], strides = [1, 1]} : vector<32x16xf32> to vector<8x16xf32>
    %93 = vector.extract_strided_slice %91 {offsets = [8, 0], sizes = [8, 16], strides = [1, 1]} : vector<32x16xf32> to vector<8x16xf32>
    %94 = vector.extract_strided_slice %91 {offsets = [16, 0], sizes = [8, 16], strides = [1, 1]} : vector<32x16xf32> to vector<8x16xf32>
    %95 = vector.extract_strided_slice %91 {offsets = [24, 0], sizes = [8, 16], strides = [1, 1]} : vector<32x16xf32> to vector<8x16xf32>
    %96 = vector.shape_cast %86 : vector<8x16xf32> to vector<1x8x16xf32>
    %97 = vector.shape_cast %87 : vector<8x16xf32> to vector<1x8x16xf32>
    %98 = vector.shape_cast %88 : vector<8x16xf32> to vector<1x8x16xf32>
    %99 = vector.shape_cast %89 : vector<8x16xf32> to vector<1x8x16xf32>
    %100 = vector.shape_cast %92 : vector<8x16xf32> to vector<1x8x16xf32>
    %101 = vector.shape_cast %93 : vector<8x16xf32> to vector<1x8x16xf32>
    %102 = vector.shape_cast %94 : vector<8x16xf32> to vector<1x8x16xf32>
    %103 = vector.shape_cast %95 : vector<8x16xf32> to vector<1x8x16xf32>
    %104 = tpu.concatenate %96, %97, %98, %99, %100, %101, %102, %103 in 0 : vector<1x8x16xf32>, vector<1x8x16xf32>, vector<1x8x16xf32>, vector<1x8x16xf32>, vector<1x8x16xf32>, vector<1x8x16xf32>, vector<1x8x16xf32>, vector<1x8x16xf32> -> vector<8x8x16xf32>
    %105 = arith.truncf %62 : vector<8x16x8xf32> to vector<8x16x8xbf16>
    %106 = arith.truncf %83 : vector<8x8x16xf32> to vector<8x8x16xbf16>
    "tpu.trace_start"() <{level = 10 : i32, message = "gqd,gdk->gqk"}> : () -> ()
    %cst_10 = arith.constant dense<0.000000e+00> : vector<8x16x16xf32>
    %107 = tpu.matmul %105, %106, %cst_10 {dimension_numbers = #tpu.dot_dimension_numbers<[2], [1], [1], [2], [0, 0, 0, 1, 1, 2], [0], [0]>} : vector<8x16x8xbf16>, vector<8x8x16xbf16>, vector<8x16x16xf32> -> vector<8x16x16xf32>
    "tpu.trace_stop"() : () -> ()
    %cst_11 = arith.constant dense<0xFF800000> : vector<8x16xf32>
    %108 = vector.multi_reduction <maximumf>, %107, %cst_11 [2] : vector<8x16x16xf32> to vector<8x16xf32>
    %109 = vector.shape_cast %108 : vector<8x16xf32> to vector<8x16x1xf32>
    %110 = vector.broadcast %109 : vector<8x16x1xf32> to vector<8x16x16xf32>
    %111 = arith.subf %107, %110 : vector<8x16x16xf32>
    %112 = math.exp %111 : vector<8x16x16xf32>
    %cst_12 = arith.constant dense<0.000000e+00> : vector<8x16xf32>
    %113 = vector.multi_reduction <add>, %112, %cst_12 [2] : vector<8x16x16xf32> to vector<8x16xf32>
    %114 = arith.truncf %104 : vector<8x8x16xf32> to vector<8x8x16xbf16>
    %115 = arith.truncf %112 : vector<8x16x16xf32> to vector<8x16x16xbf16>
    "tpu.trace_start"() <{level = 10 : i32, message = "gdk,gqk->gdq"}> : () -> ()
    %cst_13 = arith.constant dense<0.000000e+00> : vector<8x8x16xf32>
    %116 = tpu.matmul %114, %115, %cst_13 {dimension_numbers = #tpu.dot_dimension_numbers<[2], [2], [1], [1], [0, 0, 0, 1, 1, 1], [0], [0]>} : vector<8x8x16xbf16>, vector<8x16x16xbf16>, vector<8x8x16xf32> -> vector<8x8x16xf32>
    "tpu.trace_stop"() : () -> ()
    %117 = tpu.reciprocal %113 {approx = true} : vector<8x16xf32> -> vector<8x16xf32>
    %118 = vector.shape_cast %117 : vector<8x16xf32> to vector<8x1x16xf32>
    %119 = vector.broadcast %118 : vector<8x1x16xf32> to vector<8x8x16xf32>
    %120 = arith.mulf %116, %119 : vector<8x8x16xf32>
    %121 = vector.extract_strided_slice %120 {offsets = [0, 0, 0], sizes = [1, 8, 16], strides = [1, 1, 1]} : vector<8x8x16xf32> to vector<1x8x16xf32>
    %122 = vector.shape_cast %121 : vector<1x8x16xf32> to vector<8x16xf32>
    %123 = vector.extract_strided_slice %120 {offsets = [1, 0, 0], sizes = [1, 8, 16], strides = [1, 1, 1]} : vector<8x8x16xf32> to vector<1x8x16xf32>
    %124 = vector.shape_cast %123 : vector<1x8x16xf32> to vector<8x16xf32>
    %125 = vector.extract_strided_slice %120 {offsets = [2, 0, 0], sizes = [1, 8, 16], strides = [1, 1, 1]} : vector<8x8x16xf32> to vector<1x8x16xf32>
    %126 = vector.shape_cast %125 : vector<1x8x16xf32> to vector<8x16xf32>
    %127 = vector.extract_strided_slice %120 {offsets = [3, 0, 0], sizes = [1, 8, 16], strides = [1, 1, 1]} : vector<8x8x16xf32> to vector<1x8x16xf32>
    %128 = vector.shape_cast %127 : vector<1x8x16xf32> to vector<8x16xf32>
    %129 = tpu.concatenate %122, %124, %126, %128 in 0 : vector<8x16xf32>, vector<8x16xf32>, vector<8x16xf32>, vector<8x16xf32> -> vector<32x16xf32>
    %130 = tpu.transpose %129, [1, 0] : vector<32x16xf32> -> vector<16x32xf32>
    %131 = vector.extract_strided_slice %120 {offsets = [4, 0, 0], sizes = [1, 8, 16], strides = [1, 1, 1]} : vector<8x8x16xf32> to vector<1x8x16xf32>
    %132 = vector.shape_cast %131 : vector<1x8x16xf32> to vector<8x16xf32>
    %133 = vector.extract_strided_slice %120 {offsets = [5, 0, 0], sizes = [1, 8, 16], strides = [1, 1, 1]} : vector<8x8x16xf32> to vector<1x8x16xf32>
    %134 = vector.shape_cast %133 : vector<1x8x16xf32> to vector<8x16xf32>
    %135 = vector.extract_strided_slice %120 {offsets = [6, 0, 0], sizes = [1, 8, 16], strides = [1, 1, 1]} : vector<8x8x16xf32> to vector<1x8x16xf32>
    %136 = vector.shape_cast %135 : vector<1x8x16xf32> to vector<8x16xf32>
    %137 = vector.extract_strided_slice %120 {offsets = [7, 0, 0], sizes = [1, 8, 16], strides = [1, 1, 1]} : vector<8x8x16xf32> to vector<1x8x16xf32>
    %138 = vector.shape_cast %137 : vector<1x8x16xf32> to vector<8x16xf32>
    %139 = tpu.concatenate %132, %134, %136, %138 in 0 : vector<8x16xf32>, vector<8x16xf32>, vector<8x16xf32>, vector<8x16xf32> -> vector<32x16xf32>
    %140 = tpu.transpose %139, [1, 0] : vector<32x16xf32> -> vector<16x32xf32>
    %141 = tpu.concatenate %130, %140 in 0 : vector<16x32xf32>, vector<16x32xf32> -> vector<32x32xf32>
    %142 = arith.truncf %141 : vector<32x32xf32> to vector<32x32xbf16>
    %c0_14 = arith.constant 0 : index
    %c0_15 = arith.constant 0 : index
    %143 = vector.load %arg3[%c0_14, %c0_15] : memref<32x32xbf16, #tpu.memory_space<vmem>>, vector<32x32xbf16>
    %cst_16 = arith.constant dense<0.000000e+00> : vector<32x32xf32>
    %144 = tpu.matmul %142, %143, %cst_16 {dimension_numbers = #tpu.dot_dimension_numbers<[1], [0], [0], [1], [0, 0, 1, 1], [], []>} : vector<32x32xbf16>, vector<32x32xbf16>, vector<32x32xf32> -> vector<32x32xf32>
    %145 = vector.broadcast %8 : vector<1x32xf32> to vector<32x32xf32>
    %146 = arith.addf %144, %145 : vector<32x32xf32>
    %147 = arith.addf %11, %146 : vector<32x32xf32>
    %cst_17 = arith.constant dense<0.000000e+00> : vector<32xf32>
    %148 = vector.multi_reduction <add>, %147, %cst_17 [1] : vector<32x32xf32> to vector<32xf32>
    %149 = vector.shape_cast %148 : vector<32xf32> to vector<32x1xf32>
    %cst_18 = arith.constant 3.200000e+01 : f32
    %150 = vector.broadcast %cst_18 : f32 to vector<32x1xf32>
    %151 = arith.divf %149, %150 : vector<32x1xf32>
    %152 = vector.broadcast %151 : vector<32x1xf32> to vector<32x32xf32>
    %153 = arith.subf %147, %152 : vector<32x32xf32>
    %154 = arith.mulf %153, %153 : vector<32x32xf32>
    %cst_19 = arith.constant dense<0.000000e+00> : vector<32xf32>
    %155 = vector.multi_reduction <add>, %154, %cst_19 [1] : vector<32x32xf32> to vector<32xf32>
    %156 = vector.shape_cast %155 : vector<32xf32> to vector<32x1xf32>
    %cst_20 = arith.constant 3.200000e+01 : f32
    %157 = vector.broadcast %cst_20 : f32 to vector<32x1xf32>
    %158 = arith.divf %156, %157 : vector<32x1xf32>
    %159 = vector.broadcast %151 : vector<32x1xf32> to vector<32x32xf32>
    %160 = arith.subf %147, %159 : vector<32x32xf32>
    %cst_21 = arith.constant 9.99999997E-7 : f32
    %161 = vector.broadcast %cst_21 : f32 to vector<32x1xf32>
    %162 = arith.addf %158, %161 : vector<32x1xf32>
    %163 = math.rsqrt %162 : vector<32x1xf32>
    %164 = vector.broadcast %163 : vector<32x1xf32> to vector<32x32xf32>
    %165 = arith.mulf %160, %164 : vector<32x32xf32>
    %166 = vector.broadcast %3 : vector<1x32xf32> to vector<32x32xf32>
    %167 = arith.mulf %165, %166 : vector<32x32xf32>
    %168 = vector.broadcast %4 : vector<1x32xf32> to vector<32x32xf32>
    %169 = arith.addf %167, %168 : vector<32x32xf32>
    %170 = arith.truncf %169 : vector<32x32xf32> to vector<32x32xbf16>
    %c0_22 = arith.constant 0 : index
    %c0_23 = arith.constant 0 : index
    %171 = vector.load %arg4[%c0_22, %c0_23] : memref<32x64xbf16, #tpu.memory_space<vmem>>, vector<32x64xbf16>
    %cst_24 = arith.constant dense<0.000000e+00> : vector<32x64xf32>
    %172 = tpu.matmul %170, %171, %cst_24 {dimension_numbers = #tpu.dot_dimension_numbers<[1], [0], [0], [1], [0, 0, 1, 1], [], []>} : vector<32x32xbf16>, vector<32x64xbf16>, vector<32x64xf32> -> vector<32x64xf32>
    %173 = vector.broadcast %9 : vector<1x64xf32> to vector<32x64xf32>
    %174 = arith.addf %172, %173 : vector<32x64xf32>
    %cst_25 = arith.constant 5.000000e-01 : f32
    %175 = vector.broadcast %cst_25 : f32 to vector<32x64xf32>
    %176 = arith.mulf %175, %174 : vector<32x64xf32>
    %cst_26 = arith.constant 4.471500e-02 : f32
    %177 = vector.broadcast %cst_26 : f32 to vector<32x64xf32>
    %178 = arith.mulf %177, %174 : vector<32x64xf32>
    %179 = arith.mulf %178, %174 : vector<32x64xf32>
    %180 = arith.mulf %179, %174 : vector<32x64xf32>
    %181 = arith.addf %174, %180 : vector<32x64xf32>
    %cst_27 = arith.constant 0.797884583 : f32
    %182 = vector.broadcast %cst_27 : f32 to vector<32x64xf32>
    %183 = arith.mulf %182, %181 : vector<32x64xf32>
    %184 = math.tanh %183 : vector<32x64xf32>
    %cst_28 = arith.constant 1.000000e+00 : f32
    %185 = vector.broadcast %cst_28 : f32 to vector<32x64xf32>
    %186 = arith.addf %185, %184 : vector<32x64xf32>
    %187 = arith.mulf %176, %186 : vector<32x64xf32>
    %188 = arith.truncf %187 : vector<32x64xf32> to vector<32x64xbf16>
    %c0_29 = arith.constant 0 : index
    %c0_30 = arith.constant 0 : index
    %189 = vector.load %arg5[%c0_29, %c0_30] : memref<64x32xbf16, #tpu.memory_space<vmem>>, vector<64x32xbf16>
    %cst_31 = arith.constant dense<0.000000e+00> : vector<32x32xf32>
    %190 = tpu.matmul %188, %189, %cst_31 {dimension_numbers = #tpu.dot_dimension_numbers<[1], [0], [0], [1], [0, 0, 1, 1], [], []>} : vector<32x64xbf16>, vector<64x32xbf16>, vector<32x32xf32> -> vector<32x32xf32>
    %191 = vector.broadcast %10 : vector<1x32xf32> to vector<32x32xf32>
    %192 = arith.addf %190, %191 : vector<32x32xf32>
    %193 = arith.addf %147, %192 : vector<32x32xf32>
    %c0_32 = arith.constant 0 : index
    %c0_33 = arith.constant 0 : index
    %194 = vector.load %arg7[%c0_32, %c0_33] : memref<32x32xf32, #tpu.memory_space<vmem>>, vector<32x32xf32>
    tpu.vector_store %arg7[%c0_32, %c0_33], %193 {strides = array<i32>} : memref<32x32xf32, #tpu.memory_space<vmem>>, vector<32x32xf32>,
    return
  }
  func.func @transform_0(%arg0: i32) -> (i32, i32) {
    %c0_i32 = arith.constant 0 : i32
    %c0_i32_0 = arith.constant 0 : i32
    return %arg0, %c0_i32 : i32, i32
  }
  func.func @transform_1(%arg0: i32) -> (i32, i32) {
    %c0_i32 = arith.constant 0 : i32
    %c0_i32_0 = arith.constant 0 : i32
    %c0_i32_1 = arith.constant 0 : i32
    return %c0_i32, %c0_i32_0 : i32, i32
  }
  func.func @transform_2(%arg0: i32) -> (i32, i32) {
    %c0_i32 = arith.constant 0 : i32
    %c0_i32_0 = arith.constant 0 : i32
    %c0_i32_1 = arith.constant 0 : i32
    return %c0_i32, %c0_i32_0 : i32, i32
  }
  func.func @transform_3(%arg0: i32) -> (i32, i32) {
    %c0_i32 = arith.constant 0 : i32
    %c0_i32_0 = arith.constant 0 : i32
    %c0_i32_1 = arith.constant 0 : i32
    return %c0_i32, %c0_i32_0 : i32, i32
  }
  func.func @transform_4(%arg0: i32) -> (i32, i32) {
    %c0_i32 = arith.constant 0 : i32
    %c0_i32_0 = arith.constant 0 : i32
    %c0_i32_1 = arith.constant 0 : i32
    return %c0_i32, %c0_i32_0 : i32, i32
  }
  func.func @transform_5(%arg0: i32) -> (i32, i32) {
    %c0_i32 = arith.constant 0 : i32
    %c0_i32_0 = arith.constant 0 : i32
    %c0_i32_1 = arith.constant 0 : i32
    return %c0_i32, %c0_i32_0 : i32, i32
  }
  func.func @transform_6(%arg0: i32) -> (i32, i32) {
    %c0_i32 = arith.constant 0 : i32
    %c0_i32_0 = arith.constant 0 : i32
    return %arg0, %c0_i32 : i32, i32
  }
}

</mosaic_0001>

<bundles_post_ra>
// kernel: tpu_custom_call.1
= control target key start
LH: loop header
LB: loop body
LE: loop exit
PB: predicated region body
PF: predicated region fallthrough
CT: control target
= control target key end

     0   :  { %11 = vsyncpa [#allocation3], 0  ;;  %s2363_s0 = inlined_call_operand.hbm [shape: f32[32,32], index: 0, kind: input, shape index: {}]   ;;  %s2364_s1 = inlined_call_operand.vmem [shape: bf16[32,384], index: 1, kind: input, shape index: {}]   ;;  %s2365_s2 = inlined_call_operand.hbm [shape: bf16[32,32], index: 2, kind: input, shape index: {}]   ;;  %s2366_s3 = inlined_call_operand.hbm [shape: bf16[32,64], index: 3, kind: input, shape index: {}]   ;;  %s2367_s4 = inlined_call_operand.vmem [shape: bf16[64,32], index: 4, kind: input, shape index: {}]   ;;  %s2368_s5 = inlined_call_operand.hbm [shape: f32[16,128], index: 5, kind: input, shape index: {}]   ;;  %s2369_s6 = inlined_call_operand.hbm [shape: f32[32,32], index: 6, kind: output, shape index: {}]  }
   0x1   :  { %12 = vsyncpa [#allocation6], 0 }
   0x2   :  { %13 = vsyncpa [#allocation9], 0  ;;  %s34_s23 = sshll.u32 %s2365_s2, 4  ;;  %s35_s23 = int_to_ptr.hbm [resolvable:$true] %s34_s23 }
   0x3   :  { %14 = vsyncpa [#allocation4], 0  ;;  %s1950_s24 = smov [#allocation5]   ;;  %s19_s28 = sshll.u32 %s2363_s0, 4  ;;  %s20_s28 = int_to_ptr.hbm [resolvable:$true] %s19_s28 }
   0x4   :  { %s36_s25 = sshll.u32 %s1950_s24, 4  ;;  %s1951_s29 = smov 64   ;;  %s37_s25 = int_to_ptr.vmem [resolvable:$true] %s36_s25 }
   0x5   :  { %s1952_s30 = smov 4   ;;  %s1953_s7 = smov [#allocation2]  }
   0x6   :  { %42 = dma.hbm_to_vmem [thread:$0]  %s35_s23, 256, %s37_s25, [#allocation6], %s1951_s29, %s1951_s29, %s1952_s30  }
   0x7   :  { %s21_s8 = sshll.u32 %s1953_s7, 4  ;;  %s1954_s9 = smov 128   ;;  %s22_s8 = int_to_ptr.vmem [resolvable:$true] %s21_s8 }
   0x8   :  { %s1955_s10 = smov 8   ;;  %s47_s12 = sshll.u32 %s2366_s3, 4  ;;  %s48_s12 = int_to_ptr.hbm [resolvable:$true] %s47_s12 }
   0x9   :  { %27 = dma.hbm_to_vmem [thread:$0]  %s20_s28, 512, %s22_s8, [#allocation3], %s1954_s9, %s1954_s9, %s1955_s10  }
   0xa   :  { %s1956_s13 = smov [#allocation7]   ;;  %s62_s16 = sshll.u32 %s2368_s5, 4  ;;  %s63_s16 = int_to_ptr.hbm [resolvable:$true] %s62_s16 }
   0xb   :  { %s49_s0 = sshll.u32 %s1956_s13, 4  ;;  %s1957_s17 = smov [#allocation8]   ;;  %s50_s0 = int_to_ptr.vmem [resolvable:$true] %s49_s0 }
   0xc   :  { %55 = dma.hbm_to_vmem [thread:$0]  %s48_s12, 256, %s50_s0, [#allocation6], %s1951_s29, %s1951_s29, %s1952_s30  }
   0xd   :  { %s64_s18 = sshll.u32 %s1957_s17, 4  ;;  %s65_s18 = int_to_ptr.vmem [resolvable:$true] %s64_s18 }
   0xe   :  { %70 = dma.hbm_to_vmem [thread:$0]  %s63_s16, 256, %s65_s18, [#allocation9], %s1954_s9, %s1954_s9, %s1955_s10  }
   0xf   :  { %1942 = dma.done.wait [#allocation3], 512  }
  0x10   :  { %1943 = vsyncadd [#allocation3], 4294966784 }
  0x11   :  { %1944 = dma.done.wait [#allocation6], 512  }
  0x12   :  { %1945 = vsyncadd [#allocation6], 4294966784 }
  0x13   :  { %1946 = dma.done.wait [#allocation9], 256  }
  0x14   :  { %1947 = vsyncadd [#allocation9], 4294967040  ;;  %vm94_vm0 = vcmask 261120   ;;  %v92_v0 = vld [vmem:[#allocation2 + $0x10] sm:$0xff]  ;;  %v90_v1 = vld [vmem:[#allocation2] sm:$0xff]  ;;  %v1958_v8 = vmov 32.0  }
  0x15   :  { %v101_v2 = vsel %vm94_vm0, %v92_v0, 0.0  ;;  %v95_v3 = vsel %vm94_vm0, %v90_v1, 0.0  ;;  %v93_v4 = vld [vmem:[#allocation2 + $0x18] sm:$0xff]  ;;  %v91_v5 = vld [vmem:[#allocation2 + $0x8] sm:$0xff]  ;;  %1727 = vrcp.f32 %v1958_v8  ;;  %v1673_v36 = vld [vmem:[%s2364_s1 + $0x20] sm:$0xf0] }
  0x16   :  { %102 = vadd.xlane.f32.xlu1 %v101_v2  ;;  %96 = vadd.xlane.f32.xlu0 %v95_v3  ;;  %v104_v6 = vsel %vm94_vm0, %v93_v4, 0.0  ;;  %v98_v7 = vsel %vm94_vm0, %v91_v5, 0.0  ;;  %v1599_v35 = vld [vmem:[%s2364_s1 + $0x18] sm:$0xf]  ;;  %v1672_v37 = vld [vmem:[%s2364_s1 + $0x1c] sm:$0xf] }
  0x17   :  { %v1600_v38 = vor.u32 %v1673_v36, %v1599_v35  ;;  %v1601_v39 = vld [vmem:[%s2364_s1 + $0x24] sm:$0xf0]  ;;  %v1607_v40 = vld [vmem:[%s2364_s1 + $0x20] sm:$0xf]  ;;  %v1674_v41 = vld [vmem:[%s2364_s1 + $0x28] sm:$0xf0] }
  0x18   :  { %v1604_v43 = vor.u32 %v1672_v37, %v1601_v39  ;;  %v1608_v44 = vor.u32 %v1674_v41, %v1607_v40  ;;  %v1587_v45 = vld [vmem:[%s2364_s1] sm:$0xf]  ;;  %v1670_v46 = vld [vmem:[%s2364_s1 + $0x8] sm:$0xf0]  ;;  %v1669_v47 = vld [vmem:[%s2364_s1 + $0x4] sm:$0xf] }
  0x19   :  { %254 = vmatpush.bf16.msra.mxu0 %v1600_v38  ;;  %v1588_v50 = vor.u32 %v1670_v46, %v1587_v45  ;;  %v1589_v51 = vld [vmem:[%s2364_s1 + $0xc] sm:$0xf0]  ;;  %v1595_v52 = vld [vmem:[%s2364_s1 + $0x8] sm:$0xf]  ;;  %v1671_v53 = vld [vmem:[%s2364_s1 + $0x10] sm:$0xf0] }
  0x1a   :  { %273 = vmatpush.bf16.msra.mxu1 %v1604_v43  ;;  %292 = vmatpush.bf16.msra.mxu2 %v1608_v44  ;;  %v1592_v54 = vor.u32 %v1669_v47, %v1589_v51  ;;  %v1596_v55 = vor.u32 %v1671_v53, %v1595_v52  ;;  %s1959_s1 = smov 112   ;;  %s1960_s17 = smov 120   ;;  %vm521_vm14 = vcmask 1043456   ;;  %vm517_vm15 = vcmask 64512  }
  0x1b   :  { %v1728_v9 = vpop.eup %1727  ;;  %s1961_s18 = smov 104   ;;  %s1570_s28 = sshll.u32 %s2369_s6, 4  ;;  %s1571_s28 = int_to_ptr.hbm [resolvable:$true] %s1570_s28 }
  0x1c   :  { %v108_v10 = vmul.f32 32.0, %v1728_v9  ;;  %vm112_vm1 = vweird.f32 %v1728_v9 }
  0x1d   :  { %255 = vmatpush.bf16.msra.mxu0 %v1588_v50 }
  0x1e   :  { %105 = vadd.xlane.f32.xlu1 %v104_v6  ;;  %99 = vadd.xlane.f32.xlu0 %v98_v7  ;;  %v109_v11 = vsub.f32 1.0, %v108_v10 }
  0x1f   :  { %274 = vmatpush.bf16.msra.mxu1 %v1592_v54  ;;  %293 = vmatpush.bf16.msra.mxu2 %v1596_v55 }
  0x20   :  { %v110_v12 = vmul.f32 %v1728_v9, %v109_v11 }
  0x22   :  { %v111_v13 = vadd.f32 %v1728_v9, %v110_v12 }
  0x24   :  { %v2020_v14 = vsel %vm112_vm1, %v1728_v9, %v111_v13  ;;  %vm714_vm1 = vcmask 130048  }
  0x89   :  { %v103_v15 = vpop.xlane.xlu1 %102  ;;  %v97_v16 = vpop.xlane.xlu0 %96 }
  0x8a   :  { %v116_v17 = vmul.f32 %v2020_v14, %v103_v15  ;;  %v114_v18 = vmul.f32 %v2020_v14, %v97_v16 }
  0x8c   :  { %v2024_v19 = vsub.f32 %v92_v0, %v116_v17  ;;  %v2026_v20 = vsub.f32 %v90_v1, %v114_v18 }
  0x8e   :  { %v124_v21 = vmul.f32 %v2024_v19, %v2024_v19  ;;  %v122_v22 = vmul.f32 %v2026_v20, %v2026_v20 }
  0x90   :  { %v132_v23 = vsel %vm94_vm0, %v124_v21, 0.0  ;;  %v126_v24 = vsel %vm94_vm0, %v122_v22, 0.0  ;;  %v2086_v21 = vld [vmem:[#allocation8] sm:$0xff] }
  0x91   :  { %v106_v25 = vpop.xlane.xlu1 %105  ;;  %133 = vadd.xlane.f32.xlu0 %v132_v23  ;;  %127 = vadd.xlane.f32.xlu2 %v126_v24  ;;  %v100_v26 = vpop.xlane.xlu0 %99  ;;  %v305_v52 = vperm.slane %v2086_v21, 4 }
  0x92   :  { %v117_v27 = vmul.f32 %v2020_v14, %v106_v25  ;;  %v115_v28 = vmul.f32 %v2020_v14, %v100_v26  ;;  %v190_v25 = vperm.slane %v2086_v21, 0 }
  0x94   :  { %v2036_v29 = vsub.f32 %v93_v4, %v117_v27  ;;  %v2038_v30 = vsub.f32 %v91_v5, %v115_v28 }
  0x96   :  { %v125_v31 = vmul.f32 %v2036_v29, %v2036_v29  ;;  %v123_v32 = vmul.f32 %v2038_v30, %v2038_v30 }
  0x98   :  { %v135_v33 = vsel %vm94_vm0, %v125_v31, 0.0  ;;  %v129_v34 = vsel %vm94_vm0, %v123_v32, 0.0 }
  0x99   :  { %136 = vadd.xlane.f32.xlu1 %v135_v33  ;;  %130 = vadd.xlane.f32.xlu2 %v129_v34  ;;  %v195_v34 = vperm.slane %v2086_v21, 1 }
 0x104   :  { %v128_v42 = vpop.xlane.xlu2 %127  ;;  %v134_v49 = vpop.xlane.xlu0 %133 }
 0x105   :  { %v138_v48 = vmul.f32 %v128_v42, %v2020_v14  ;;  %v140_v57 = vmul.f32 %v134_v49, %v2020_v14  ;;  %v310_v49 = vperm.slane %v2086_v21, 5 }
 0x107   :  { %v142_v56 = vadd.f32 1e-06, %v138_v48  ;;  %v144_v58 = vadd.f32 1e-06, %v140_v57 }
 0x109   :  { %1729 = vrsqrt.f32 %v142_v56  ;;  %vm152_vm3 = vweird.f32 %v142_v56  ;;  %vm172_vm10 = vweird.f32 %v144_v58 }
 0x10a   :  { %1731 = vrsqrt.f32 %v144_v58 }
 0x10c   :  { %v137_v59 = vpop.xlane.xlu1 %136  ;;  %v131_v60 = vpop.xlane.xlu2 %130 }
 0x10d   :  { %v141_v61 = vmul.f32 %v137_v59, %v2020_v14  ;;  %v139_v62 = vmul.f32 %v131_v60, %v2020_v14 }
 0x10f   :  { %v1730_v63 = vpop.eup %1729  ;;  %v145_v0 = vadd.f32 1e-06, %v141_v61  ;;  %v143_v1 = vadd.f32 1e-06, %v139_v62 }
 0x110   :  { %v147_v2 = vmul.f32 %v1730_v63, %v142_v56  ;;  %v1732_v5 = vpop.eup %1731  ;;  %vm153_vm2 = vweird.f32 %v1730_v63 }
 0x111   :  { %1733 = vrsqrt.f32 %v145_v0  ;;  %v167_v11 = vmul.f32 %v1732_v5, %v144_v58  ;;  %vm154_vm4 = vmor %vm152_vm3, %vm153_vm2  ;;  %vm162_vm6 = vweird.f32 %v143_v1  ;;  %vm182_vm8 = vweird.f32 %v145_v0 }
 0x112   :  { %v148_v3 = vmul.f32 %v1730_v63, %v147_v2  ;;  %1735 = vrsqrt.f32 %v143_v1  ;;  %vm173_vm11 = vweird.f32 %v1732_v5  ;;  %vm1112_vm2 = vcmask 130112  }
 0x113   :  { %v168_v17 = vmul.f32 %v1732_v5, %v167_v11  ;;  %vm174_vm13 = vmor %vm172_vm10, %vm173_vm11 }
 0x114   :  { %v149_v4 = vmul.f32 0.5, %v148_v3  ;;  %v2107_v3 = vperm.slane %v2086_v21, 6 }
 0x115   :  { %v169_v26 = vmul.f32 0.5, %v168_v17 }
 0x116   :  { %v150_v6 = vsub.f32 1.5, %v149_v4 }
 0x117   :  { %v1734_v7 = vpop.eup %1733  ;;  %v170_v35 = vsub.f32 1.5, %v169_v26 }
 0x118   :  { %v1736_v8 = vpop.eup %1735  ;;  %v177_v9 = vmul.f32 %v1734_v7, %v145_v0  ;;  %v151_v10 = vmul.f32 %v1730_v63, %v150_v6  ;;  %vm183_vm9 = vweird.f32 %v1734_v7 }
 0x119   :  { %v157_v12 = vmul.f32 %v1736_v8, %v143_v1  ;;  %vm163_vm5 = vweird.f32 %v1736_v8  ;;  %vm184_vm12 = vmor %vm182_vm8, %vm183_vm9  ;;  %v171_v39 = vmul.f32 %v1732_v5, %v170_v35 }
 0x11a   :  { %v178_v13 = vmul.f32 %v1734_v7, %v177_v9  ;;  %v155_v16 = vsel %vm154_vm4, %v1730_v63, %v151_v10  ;;  %vm164_vm7 = vmor %vm162_vm6, %vm163_vm5 }
 0x11b   :  { %v158_v15 = vmul.f32 %v1736_v8, %v157_v12  ;;  %v186_v24 = vmul.f32 %v155_v16, %v2026_v20 }
 0x11c   :  { %v179_v22 = vmul.f32 0.5, %v178_v13 }
 0x11d   :  { %v159_v18 = vmul.f32 0.5, %v158_v15  ;;  %v191_v33 = vmul.f32 %v190_v25, %v186_v24 }
 0x11e   :  { %v180_v28 = vsub.f32 1.5, %v179_v22 }
 0x11f   :  { %v160_v23 = vsub.f32 1.5, %v159_v18  ;;  %v196_v37 = vadd.f32 %v195_v34, %v191_v33 }
 0x120   :  { %v181_v20 = vmul.f32 %v1734_v7, %v180_v28 }
 0x121   :  { %v161_v27 = vmul.f32 %v1736_v8, %v160_v23 }
 0x122   :  { %v185_v41 = vsel %vm184_vm12, %v1734_v7, %v181_v20 }
 0x123   :  { %v165_v31 = vsel %vm164_vm7, %v1736_v8, %v161_v27  ;;  %v189_v42 = vmul.f32 %v185_v41, %v2036_v29 }
 0x124   :  { %v187_v32 = vmul.f32 %v165_v31, %v2038_v30  ;;  %v175_v30 = vsel %vm174_vm13, %v1732_v5, %v171_v39 }
 0x125   :  { %v188_v43 = vmul.f32 %v175_v30, %v2024_v19  ;;  %v194_v44 = vmul.f32 %v190_v25, %v189_v42 }
 0x126   :  { %v192_v36 = vmul.f32 %v190_v25, %v187_v32 }
 0x127   :  { %v193_v45 = vmul.f32 %v190_v25, %v188_v43  ;;  %v199_v46 = vadd.f32 %v195_v34, %v194_v44 }
 0x128   :  { %v197_v38 = vadd.f32 %v195_v34, %v192_v36 }
 0x129   :  { %v198_v47 = vadd.f32 %v195_v34, %v193_v45 }
 0x12a   :  { %v200_v40 = vpack.c.bf16 %v197_v38, %v196_v37 }
 0x12b   :  { %v201_v48 = vpack.c.bf16 %v199_v46, %v198_v47 }
 0x12c   :  { %1609 = vmatmul.msk.bf16.vlgmr.msra.gmra.mxu0 %vm94_vm0, %v200_v40  ;;  %1611 = vmatmul.msk.bf16.vlgmr.msra.gmra.mxu1 %vm94_vm0, %v200_v40 }
 0x12d   :  { %1613 = vmatmul.msk.bf16.vlgmr.msra.gmra.mxu2 %vm94_vm0, %v200_v40 }
 0x13c   :  { %1610 = vmatmul.msk.bf16.gmra.mxu0 %vm94_vm0, %v201_v48  ;;  %1612 = vmatmul.msk.bf16.gmra.mxu1 %vm94_vm0, %v201_v48 }
 0x13d   :  { %1614 = vmatmul.msk.bf16.gmra.mxu2 %vm94_vm0, %v201_v48 }
 0x1a9   :  { %v257_v50 = vpop.f32.mrf.mxu0  ;;  %v276_v51 = vpop.f32.mrf.mxu1 }
 0x1aa   :  { %v311_v29 = vadd.f32 %v310_v49, %v276_v51  ;;  %v306_v19 = vadd.f32 %v305_v52, %v257_v50 }
 0x1ac   :  { %360 = vxpose.xlu1.b32.start [1/2] (short) (narrow) %v311_v29, 32  ;;  %v488_v56 = vpack.c.bf16 %v306_v19, %v306_v19 }
 0x1ae   :  { %v514_v61 = vunpack.c.l.b16 %v488_v56 }
 0x1b0   :  { %v2102_v53 = vpop.f32.mrf.mxu2 }
 0x1b1   :  { %v259_v54 = vpop.f32.mrf.mxu0  ;;  %v278_v55 = vpop.f32.mrf.mxu1 }
 0x1b2   :  { %v307_v57 = vadd.f32 %v305_v52, %v259_v54  ;;  %v312_v58 = vadd.f32 %v310_v49, %v278_v55 }
 0x1b4   :  { %v489_v59 = vpack.c.bf16 %v307_v57, %v307_v57  ;;  %361 = vxpose.xlu1.b32.end [2/2] (short) (narrow) %v312_v58, 32  ;;  %v1702_v60 = vpack.i.bf16 %v307_v57, %v306_v19 }
 0x1b6   :  { %v515_v62 = vunpack.c.l.b16 %v489_v59  ;;  %1703 = vrot.lane.b32.xlu0 %v1702_v60, %s1959_s1  ;;  %1698 = vrot.lane.b32.xlu2 %v1702_v60, %s1960_s17 }
 0x1b8   :  { %v2104_v63 = vpop.f32.mrf.mxu2  ;;  %v516_v0 = vpack.c.b16 %v515_v62, %v514_v61 }
 0x1b9   :  { %v262_v1 = vpop.f32.mrf.mxu0  ;;  %v281_v15 = vpop.f32.mrf.mxu1 }
 0x1ba   :  { %v308_v2 = vadd.f32 %v305_v52, %v262_v1  ;;  %v313_v16 = vadd.f32 %v310_v49, %v281_v15 }
 0x1bc   :  { %v496_v7 = vpack.c.bf16 %v308_v2, %v308_v2 }
 0x1be   :  { %1708 = vrot.lane.b32.xlu0 %v1702_v60, %s1961_s18  ;;  %v2112_v11 = vunpack.c.l.b16 %v496_v7 }
 0x1c0   :  { %v300_v4 = vpop.f32.mrf.mxu2 }
 0x1c1   :  { %v2110_v5 = vadd.f32 %v2107_v3, %v300_v4  ;;  %v264_v6 = vpop.f32.mrf.mxu0  ;;  %v283_v17 = vpop.f32.mrf.mxu1 }
 0x1c2   :  { %v309_v8 = vadd.f32 %v305_v52, %v264_v6  ;;  %v314_v18 = vadd.f32 %v310_v49, %v283_v17 }
 0x1c4   :  { %v497_v9 = vpack.c.bf16 %v309_v8, %v309_v8  ;;  %v1722_v10 = vpack.i.bf16 %v309_v8, %v308_v2 }
 0x1c6   :  { %v2114_v12 = vunpack.c.l.b16 %v497_v9  ;;  %1723 = vrot.lane.b32.xlu0 %v1722_v10, %s1961_s18  ;;  %1713 = vrot.lane.b32.xlu2 %v1722_v10, %s1960_s17 }
 0x1c8   :  { %v618_v13 = vpack.c.b16 %v2114_v12, %v2112_v11 }
 0x1ce   :  { %1718 = vrot.lane.b32.xlu2 %v1722_v10, %s1959_s1 }
 0x1f4   :  { %392 = vxpose.xlu2.b32.start [1/2] (short) (narrow) %v313_v16, 32 }
 0x1fc   :  { %393 = vxpose.xlu2.b32.end [2/2] (short) (narrow) %v314_v18, 32 }
 0x210   :  { %v1699_v21 = vpop.permute.xlu2 %1698 }
 0x211   :  { %v1701_v23 = vunpack.i.h.bf16 %v1699_v21  ;;  %v1700_v24 = vunpack.i.l.bf16 %v1699_v21 }
 0x213   :  { %v491_v28 = vpack.c.bf16 %v1701_v23, %v1701_v23  ;;  %v490_v31 = vpack.c.bf16 %v1700_v24, %v1700_v24 }
 0x215   :  { %v542_v33 = vunpack.c.l.b16 %v491_v28  ;;  %v541_v34 = vunpack.c.l.b16 %v490_v31 }
 0x217   :  { %v543_v20 = vpack.c.b16 %v542_v33, %v541_v34 }
 0x220   :  { %v1714_v56 = vpop.permute.xlu2 %1713 }
 0x221   :  { %v1716_v59 = vunpack.i.h.bf16 %v1714_v56  ;;  %v1715_v60 = vunpack.i.l.bf16 %v1714_v56 }
 0x223   :  { %v498_v1 = vpack.c.bf16 %v1715_v60, %v1715_v60 }
 0x225   :  { %v641_v7 = vunpack.c.l.b16 %v498_v1 }
 0x228   :  { %v1704_v27 = vpop.permute.xlu0 %1703  ;;  %v1719_v57 = vpop.permute.xlu2 %1718 }
 0x229   :  { %v1706_v38 = vunpack.i.h.bf16 %v1704_v27  ;;  %v1705_v40 = vunpack.i.l.bf16 %v1704_v27  ;;  %v1721_v2 = vunpack.i.h.bf16 %v1719_v57  ;;  %v1720_v8 = vunpack.i.l.bf16 %v1719_v57 }
 0x22b   :  { %v493_v44 = vpack.c.bf16 %v1706_v38, %v1706_v38  ;;  %v492_v45 = vpack.c.bf16 %v1705_v40, %v1705_v40  ;;  %v501_v15 = vpack.c.bf16 %v1721_v2, %v1721_v2  ;;  %v500_v17 = vpack.c.bf16 %v1720_v8, %v1720_v8 }
 0x22d   :  { %v567_v48 = vunpack.c.l.b16 %v493_v44  ;;  %v566_v50 = vunpack.c.l.b16 %v492_v45  ;;  %v667_v21 = vunpack.c.l.b16 %v501_v15  ;;  %v666_v11 = vunpack.c.l.b16 %v500_v17 }
 0x22f   :  { %v568_v54 = vpack.c.b16 %v567_v48, %v566_v50 }
 0x230   :  { %v1709_v37 = vpop.permute.xlu0 %1708 }
 0x231   :  { %v1711_v41 = vunpack.i.h.bf16 %v1709_v37  ;;  %v1710_v30 = vunpack.i.l.bf16 %v1709_v37 }
 0x233   :  { %v495_v46 = vpack.c.bf16 %v1711_v41, %v1711_v41  ;;  %v494_v47 = vpack.c.bf16 %v1710_v30, %v1710_v30 }
 0x235   :  { %v592_v51 = vunpack.c.l.b16 %v495_v46  ;;  %v591_v52 = vunpack.c.l.b16 %v494_v47  ;;  %v316_v47 = vadd.f32 %v2107_v3, %v2102_v53 }
 0x237   :  { %v593_v55 = vpack.c.b16 %v592_v51, %v591_v52 }
 0x238   :  { %v1724_v18 = vpop.permute.xlu0 %1723 }
 0x239   :  { %v1726_v12 = vunpack.i.h.bf16 %v1724_v18 }
 0x250   :  { %v376_v22 = vpop.trf.xlu1 }
 0x251   :  { %v504_v25 = vpack.c.bf16 %v376_v22, %v376_v22 }
 0x253   :  { %v523_v26 = vsel %vm521_vm14, %v504_v25, 0  ;;  %v668_v25 = vpack.c.b16 %v667_v21, %v666_v11 }
 0x254   :  { %532 = vmatpush.bf16.msrb.mxu0 %v523_v26  ;;  %v503_v26 = vpack.c.bf16 %v1726_v12, %v1726_v12 }
 0x256   :  { %v692_v31 = vunpack.c.l.b16 %v503_v26 }
 0x257   :  { %1615 = vmatmul.msk.bf16.vlgmr.msrb.gmra.mxu0 %vm517_vm15, %v516_v0  ;;  %v499_v0 = vpack.c.bf16 %v1716_v59, %v1716_v59 }
 0x258   :  { %v377_v32 = vpop.trf.xlu1 }
 0x259   :  { %v505_v35 = vpack.c.bf16 %v377_v32, %v377_v32  ;;  %v642_v6 = vunpack.c.l.b16 %v499_v0 }
 0x25b   :  { %v548_v36 = vsel %vm521_vm14, %v505_v35, 0  ;;  %v643_v16 = vpack.c.b16 %v642_v6, %v641_v7 }
 0x25c   :  { %557 = vmatpush.bf16.msra.mxu3 %v548_v36 }
 0x25f   :  { %1616 = vmatmul.msk.bf16.vlgmr.msra.gmra.mxu3 %vm517_vm15, %v543_v20 }
 0x260   :  { %v378_v39 = vpop.trf.xlu1 }
 0x261   :  { %v506_v42 = vpack.c.bf16 %v378_v39, %v378_v39 }
 0x263   :  { %v573_v43 = vsel %vm521_vm14, %v506_v42, 0 }
 0x264   :  { %582 = vmatpush.bf16.msrb.mxu3 %v573_v43 }
 0x268   :  { %v379_v49 = vpop.trf.xlu1 }
 0x269   :  { %v507_v29 = vpack.c.bf16 %v379_v49, %v379_v49  ;;  %v317_v49 = vadd.f32 %v2107_v3, %v2104_v63 }
 0x26b   :  { %v598_v19 = vsel %vm521_vm14, %v507_v29, 0  ;;  %v2171_v29 = vpop.f32.mrf.mxu2 }
 0x26c   :  { %607 = vmatpush.bf16.msra.mxu0 %v598_v19 }
 0x26f   :  { %1617 = vmatmul.msk.bf16.vlgmr.msrb.gmra.mxu3 %vm517_vm15, %v568_v54  ;;  %1618 = vmatmul.msk.bf16.vlgmr.msra.gmra.mxu0 %vm517_vm15, %v593_v55 }
 0x28d   :  { %v408_v58 = vpop.trf.xlu2 }
 0x28e   :  { %v508_v61 = vpack.c.bf16 %v408_v58, %v408_v58 }
 0x290   :  { %v623_v62 = vsel %vm521_vm14, %v508_v61, 0 }
 0x291   :  { %632 = vmatpush.bf16.msrb.mxu1 %v623_v62 }
 0x294   :  { %1619 = vmatmul.msk.bf16.vlgmr.msrb.gmra.mxu1 %vm517_vm15, %v618_v13  ;;  %v1725_v13 = vunpack.i.l.bf16 %v1724_v18 }
 0x295   :  { %v409_v4 = vpop.trf.xlu2 }
 0x296   :  { %v509_v9 = vpack.c.bf16 %v409_v4, %v409_v4  ;;  %v502_v27 = vpack.c.bf16 %v1725_v13, %v1725_v13 }
 0x298   :  { %v648_v10 = vsel %vm521_vm14, %v509_v9, 0  ;;  %v691_v32 = vunpack.c.l.b16 %v502_v27 }
 0x299   :  { %657 = vmatpush.bf16.msrb.mxu2 %v648_v10 }
 0x29a   :  { %v693_v35 = vpack.c.b16 %v692_v31, %v691_v32 }
 0x29c   :  { %1620 = vmatmul.msk.bf16.vlgmr.msrb.gmra.mxu2 %vm517_vm15, %v643_v16 }
 0x29d   :  { %v410_v22 = vpop.trf.xlu2 }
 0x29e   :  { %v510_v23 = vpack.c.bf16 %v410_v22, %v410_v22 }
 0x2a0   :  { %v673_v24 = vsel %vm521_vm14, %v510_v23, 0 }
 0x2a1   :  { %682 = vmatpush.bf16.msra.mxu3 %v673_v24 }
 0x2a4   :  { %1621 = vmatmul.msk.bf16.vlgmr.msra.gmra.mxu3 %vm517_vm15, %v668_v25 }
 0x2a5   :  { %v411_v28 = vpop.trf.xlu2 }
 0x2a6   :  { %v511_v33 = vpack.c.bf16 %v411_v28, %v411_v28 }
 0x2a8   :  { %v698_v34 = vsel %vm521_vm14, %v511_v33, 0 }
 0x2a9   :  { %707 = vmatpush.bf16.msrb.mxu0 %v698_v34 }
 0x2ac   :  { %1622 = vmatmul.msk.bf16.vlgmr.msrb.gmra.mxu0 %vm517_vm15, %v693_v35  ;;  %vm1530_vm15 = vcmask 523264  }
 0x2d4   :  { %v534_v36 = vpop.f32.mrf.mxu0 }
 0x2d5   :  { %v715_v20 = vsel %vm714_vm1, %v534_v36, -inf }
 0x2d6   :  { %716 = vmax.xlane.f32.xlu0 %v715_v20 }
 0x2dc   :  { %v536_v37 = vpop.f32.mrf.mxu0 }
 0x2dd   :  { %v718_v38 = vsel %vm714_vm1, %v536_v37, -inf }
 0x2de   :  { %719 = vmax.xlane.f32.xlu2 %v718_v38 }
 0x2e2   :  { %v2139_v39 = vpop.f32.mrf.mxu3 }
 0x2e3   :  { %v721_v48 = vsel %vm714_vm1, %v2139_v39, -inf }
 0x2ea   :  { %v2141_v40 = vpop.f32.mrf.mxu3 }
 0x2eb   :  { %v724_v41 = vsel %vm714_vm1, %v2141_v40, -inf }
 0x2ec   :  { %725 = vmax.xlane.f32.xlu1 %v724_v41  ;;  %v2153_v45 = vpop.f32.mrf.mxu0 }
 0x2ed   :  { %v733_v46 = vsel %vm714_vm1, %v2153_v45, -inf }
 0x2f2   :  { %v2173_v19 = vpop.f32.mrf.mxu3 }
 0x2f3   :  { %v727_v63 = vsel %vm714_vm1, %v2173_v19, -inf }
 0x2f4   :  { %v2163_v50 = vpop.f32.mrf.mxu0 }
 0x2f5   :  { %v736_v51 = vsel %vm714_vm1, %v2163_v50, -inf }
 0x2fa   :  { %v2186_v4 = vpop.f32.mrf.mxu3 }
 0x2fb   :  { %v730_v6 = vsel %vm714_vm1, %v2186_v4, -inf }
 0x311   :  { %v2145_v30 = vpop.f32.mrf.mxu1 }
 0x312   :  { %v739_v42 = vsel %vm714_vm1, %v2145_v30, -inf }
 0x313   :  { %740 = vmax.xlane.f32.xlu0 %v739_v42 }
 0x319   :  { %v2149_v43 = vpop.f32.mrf.mxu1 }
 0x31a   :  { %v742_v44 = vsel %vm714_vm1, %v2149_v43, -inf }
 0x31b   :  { %743 = vmax.xlane.f32.xlu0 %v742_v44 }
 0x31f   :  { %v2177_v54 = vpop.f32.mrf.mxu2 }
 0x320   :  { %v745_v57 = vsel %vm714_vm1, %v2177_v54, -inf }
 0x323   :  { %734 = vmax.xlane.f32.xlu0 %v733_v46 }
 0x326   :  { %424 = vxpose.xlu1.b32.start [1/2] (short) (narrow) %v316_v47, 32 }
 0x327   :  { %v2191_v15 = vpop.f32.mrf.mxu2  ;;  %v2196_v11 = vpop.f32.mrf.mxu3 }
 0x328   :  { %v748_v21 = vsel %vm714_vm1, %v2191_v15, -inf  ;;  %v751_v12 = vsel %vm714_vm1, %v2196_v11, -inf }
 0x329   :  { %v2167_v52 = vpop.f32.mrf.mxu0 }
 0x32a   :  { %v757_v53 = vsel %vm714_vm1, %v2167_v52, -inf }
 0x32b   :  { %722 = vmax.xlane.f32.xlu0 %v721_v48 }
 0x32e   :  { %425 = vxpose.xlu1.b32.end [2/2] (short) (narrow) %v317_v49, 32 }
 0x32f   :  { %v2200_v13 = vpop.f32.mrf.mxu3 }
 0x330   :  { %v754_v23 = vsel %vm714_vm1, %v2200_v13, -inf }
 0x331   :  { %v2181_v59 = vpop.f32.mrf.mxu0 }
 0x332   :  { %v760_v62 = vsel %vm714_vm1, %v2181_v59, -inf }
 0x333   :  { %737 = vmax.xlane.f32.xlu0 %v736_v51 }
 0x33b   :  { %758 = vmax.xlane.f32.xlu0 %v757_v53 }
 0x343   :  { %728 = vmax.xlane.f32.xlu0 %v727_v63 }
 0x349   :  { %v717_v55 = vpop.xlane.xlu0 %716 }
 0x34a   :  { %v763_v56 = vsub.f32 %v534_v36, %v717_v55 }
 0x34b   :  { %746 = vmax.xlane.f32.xlu0 %v745_v57 }
 0x34c   :  { %v779_v58 = vmul.f32 1.442695, %v763_v56 }
 0x34e   :  { %1737 = vpow2.f32 %v779_v58 }
 0x351   :  { %v720_v60 = vpop.xlane.xlu2 %719 }
 0x352   :  { %v764_v61 = vsub.f32 %v536_v37, %v720_v60 }
 0x353   :  { %761 = vmax.xlane.f32.xlu0 %v760_v62 }
 0x354   :  { %v1738_v0 = vpop.eup %1737  ;;  %v781_v1 = vmul.f32 1.442695, %v764_v61 }
 0x355   :  { %v811_v2 = vsel %vm714_vm1, %v1738_v0, 0.0  ;;  %v867_v7 = vpack.c.bf16 %v1738_v0, %v1738_v0 }
 0x356   :  { %1739 = vpow2.f32 %v781_v1  ;;  %812 = vadd.xlane.f32.xlu2 %v811_v2 }
 0x357   :  { %v885_v16 = vunpack.c.l.b16 %v867_v7 }
 0x35b   :  { %731 = vmax.xlane.f32.xlu0 %v730_v6 }
 0x35c   :  { %v1740_v8 = vpop.eup %1739 }
 0x35d   :  { %v814_v9 = vsel %vm714_vm1, %v1740_v8, 0.0  ;;  %v868_v10 = vpack.c.bf16 %v1740_v8, %v1740_v8 }
 0x35e   :  { %815 = vadd.xlane.f32.xlu2 %v814_v9 }
 0x35f   :  { %v886_v17 = vunpack.c.l.b16 %v868_v10  ;;  %v726_v32 = vpop.xlane.xlu1 %725 }
 0x360   :  { %v766_v35 = vsub.f32 %v2141_v40, %v726_v32 }
 0x361   :  { %v887_v18 = vpack.c.b16 %v886_v17, %v885_v16 }
 0x362   :  { %v785_v42 = vmul.f32 1.442695, %v766_v35 }
 0x363   :  { %749 = vmax.xlane.f32.xlu0 %v748_v21  ;;  %v892_v22 = vsel %vm714_vm1, %v887_v18, 0 }
 0x364   :  { %901 = vmatpush.bf16.xpose.msra.mxu1 %v892_v22 }
 0x36b   :  { %752 = vmax.xlane.f32.xlu0 %v751_v12 }
 0x373   :  { %755 = vmax.xlane.f32.xlu0 %v754_v23 }
 0x386   :  { %v741_v24 = vpop.xlane.xlu0 %740 }
 0x387   :  { %v771_v25 = vsub.f32 %v2145_v30, %v741_v24 }
 0x389   :  { %v795_v26 = vmul.f32 1.442695, %v771_v25 }
 0x38b   :  { %1741 = vpow2.f32 %v795_v26 }
 0x38e   :  { %v744_v27 = vpop.xlane.xlu0 %743 }
 0x38f   :  { %v772_v28 = vsub.f32 %v2149_v43, %v744_v27 }
 0x391   :  { %v797_v31 = vmul.f32 1.442695, %v772_v28  ;;  %v1742_v33 = vpop.eup %1741 }
 0x392   :  { %v875_v20 = vpack.c.bf16 %v1742_v33, %v1742_v33  ;;  %v835_v17 = vsel %vm714_vm1, %v1742_v33, 0.0 }
 0x393   :  { %1743 = vpow2.f32 %v797_v31 }
 0x394   :  { %v981_v30 = vunpack.c.l.b16 %v875_v20 }
 0x396   :  { %v735_v34 = vpop.xlane.xlu0 %734 }
 0x397   :  { %v769_v36 = vsub.f32 %v2153_v45, %v735_v34  ;;  %v319_v45 = vadd.f32 %v2107_v3, %v2171_v29 }
 0x399   :  { %v1744_v37 = vpop.eup %1743  ;;  %v791_v38 = vmul.f32 1.442695, %v769_v36 }
 0x39a   :  { %v876_v41 = vpack.c.bf16 %v1744_v37, %v1744_v37  ;;  %v838_v12 = vsel %vm714_vm1, %v1744_v37, 0.0 }
 0x39b   :  { %1745 = vpow2.f32 %v791_v38 }
 0x39c   :  { %456 = vxpose.xlu0.b32.start [1/2] (short) (narrow) %v2110_v5, 32  ;;  %v982_v44 = vunpack.c.l.b16 %v876_v41  ;;  %1747 = vpow2.f32 %v785_v42 }
 0x39e   :  { %v723_v43 = vpop.xlane.xlu0 %722  ;;  %v983_v46 = vpack.c.b16 %v982_v44, %v981_v30 }
 0x39f   :  { %v765_v47 = vsub.f32 %v2139_v39, %v723_v43 }
 0x3a0   :  { %v988_v48 = vsel %vm714_vm1, %v983_v46, 0 }
 0x3a1   :  { %v1746_v40 = vpop.eup %1745  ;;  %v783_v49 = vmul.f32 1.442695, %v765_v47  ;;  %997 = vmatpush.bf16.xpose.msrb.mxu1 %v988_v48 }
 0x3a2   :  { %v829_v51 = vsel %vm714_vm1, %v1746_v40, 0.0  ;;  %v2214_v5 = vpop.eup %1747  ;;  %v873_v0 = vpack.c.bf16 %v1746_v40, %v1746_v40 }
 0x3a3   :  { %1749 = vpow2.f32 %v783_v49  ;;  %830 = vadd.xlane.f32.xlu1 %v829_v51  ;;  %v870_v39 = vpack.c.bf16 %v2214_v5, %v2214_v5 }
 0x3a4   :  { %457 = vxpose.xlu0.b32.end [2/2] (short) (narrow) %v319_v45, 32  ;;  %v957_v6 = vunpack.c.l.b16 %v873_v0 }
 0x3a5   :  { %v910_v29 = vunpack.c.l.b16 %v870_v39 }
 0x3a6   :  { %v738_v53 = vpop.xlane.xlu0 %737 }
 0x3a7   :  { %v770_v63 = vsub.f32 %v2163_v50, %v738_v53 }
 0x3a9   :  { %v1750_v55 = vpop.eup %1749  ;;  %v793_v56 = vmul.f32 1.442695, %v770_v63 }
 0x3aa   :  { %v817_v57 = vsel %vm714_vm1, %v1750_v55, 0.0  ;;  %v869_v58 = vpack.c.bf16 %v1750_v55, %v1750_v55 }
 0x3ab   :  { %1751 = vpow2.f32 %v793_v56  ;;  %818 = vadd.xlane.f32.xlu2 %v817_v57 }
 0x3ac   :  { %v909_v3 = vunpack.c.l.b16 %v869_v58 }
 0x3ae   :  { %v759_v60 = vpop.xlane.xlu0 %758  ;;  %v911_v61 = vpack.c.b16 %v910_v29, %v909_v3 }
 0x3af   :  { %v777_v16 = vsub.f32 %v2167_v52, %v759_v60 }
 0x3b0   :  { %v916_v62 = vsel %vm714_vm1, %v911_v61, 0 }
 0x3b1   :  { %v1752_v1 = vpop.eup %1751  ;;  %925 = vmatpush.bf16.xpose.msra.mxu2 %v916_v62  ;;  %v807_v18 = vmul.f32 1.442695, %v777_v16 }
 0x3b2   :  { %v832_v50 = vsel %vm714_vm1, %v1752_v1, 0.0  ;;  %v874_v2 = vpack.c.bf16 %v1752_v1, %v1752_v1 }
 0x3b3   :  { %833 = vadd.xlane.f32.xlu2 %v832_v50  ;;  %1753 = vpow2.f32 %v807_v18 }
 0x3b4   :  { %v958_v7 = vunpack.c.l.b16 %v874_v2 }
 0x3b6   :  { %v729_v8 = vpop.xlane.xlu0 %728  ;;  %v959_v9 = vpack.c.b16 %v958_v7, %v957_v6 }
 0x3b7   :  { %v767_v22 = vsub.f32 %v2173_v19, %v729_v8 }
 0x3b8   :  { %v964_v10 = vsel %vm714_vm1, %v959_v9, 0 }
 0x3b9   :  { %973 = vmatpush.bf16.xpose.msra.mxu0 %v964_v10  ;;  %v787_v23 = vmul.f32 1.442695, %v767_v22  ;;  %v1754_v25 = vpop.eup %1753 }
 0x3ba   :  { %v853_v31 = vsel %vm714_vm1, %v1754_v25, 0.0  ;;  %v881_v36 = vpack.c.bf16 %v1754_v25, %v1754_v25 }
 0x3bb   :  { %836 = vadd.xlane.f32.xlu2 %v835_v17  ;;  %1755 = vpow2.f32 %v787_v23 }
 0x3bc   :  { %v1053_v42 = vunpack.c.l.b16 %v881_v36 }
 0x3be   :  { %v747_v21 = vpop.xlane.xlu0 %746 }
 0x3bf   :  { %v773_v52 = vsub.f32 %v2177_v54, %v747_v21 }
 0x3c1   :  { %v799_v33 = vmul.f32 1.442695, %v773_v52  ;;  %v1756_v34 = vpop.eup %1755  ;;  %v820_v52 = vsel %vm714_vm1, %v2214_v5, 0.0 }
 0x3c2   :  { %v823_v54 = vsel %vm714_vm1, %v1756_v34, 0.0  ;;  %v871_v48 = vpack.c.bf16 %v1756_v34, %v1756_v34 }
 0x3c3   :  { %839 = vadd.xlane.f32.xlu2 %v838_v12 }
 0x3c4   :  { %v933_v63 = vunpack.c.l.b16 %v871_v48 }
 0x3c6   :  { %v762_v24 = vpop.xlane.xlu0 %761 }
 0x3c7   :  { %v778_v26 = vsub.f32 %v2181_v59, %v762_v24 }
 0x3c9   :  { %v809_v27 = vmul.f32 1.442695, %v778_v26 }
 0x3ca   :  { %v440_v28 = vpop.trf.xlu1 }
 0x3cb   :  { %1757 = vpow2.f32 %v809_v27  ;;  %v859_v32 = vpack.c.bf16 %v440_v28, %v440_v28  ;;  %854 = vadd.xlane.f32.xlu2 %v853_v31  ;;  %v813_v27 = vpop.xlane.xlu2 %812  ;;  %v1107_v31 = vlaneseq }
 0x3cc   :  { %1759 = vpow2.f32 %v799_v33 }
 0x3cd   :  { %1623 = vmatmul.msk.bf16.vlgmr.msra.gmra.mxu1 %vm714_vm1, %v859_v32  ;;  %v2251_v33 = vand.u32 127, %v1107_v31 }
 0x3ce   :  { %v732_v19 = vpop.xlane.xlu0 %731 }
 0x3cf   :  { %v768_v35 = vsub.f32 %v2186_v4, %v732_v19  ;;  %v2254_v34 = vadd.s32 4294967288, %v2251_v33 }
 0x3d1   :  { %v1758_v20 = vpop.eup %1757  ;;  %v789_v59 = vmul.f32 1.442695, %v768_v35 }
 0x3d2   :  { %v441_v37 = vpop.trf.xlu1  ;;  %v882_v38 = vpack.c.bf16 %v1758_v20, %v1758_v20  ;;  %v1760_v46 = vpop.eup %1759  ;;  %v856_v60 = vsel %vm714_vm1, %v1758_v20, 0.0 }
 0x3d3   :  { %1761 = vpow2.f32 %v789_v59  ;;  %v860_v41 = vpack.c.bf16 %v441_v37, %v441_v37  ;;  %824 = vadd.xlane.f32.xlu2 %v823_v54  ;;  %v841_v51 = vsel %vm714_vm1, %v1760_v46, 0.0  ;;  %v877_v58 = vpack.c.bf16 %v1760_v46, %v1760_v46  ;;  %v816_v28 = vpop.xlane.xlu2 %815 }
 0x3d4   :  { %v1054_v30 = vunpack.c.l.b16 %v882_v38 }
 0x3d5   :  { %1624 = vmatmul.msk.bf16.vlgmr.msra.gmra.mxu2 %vm714_vm1, %v860_v41  ;;  %v1005_v50 = vunpack.c.l.b16 %v877_v58 }
 0x3d6   :  { %v750_v44 = vpop.xlane.xlu0 %749  ;;  %v1055_v43 = vpack.c.b16 %v1054_v30, %v1053_v42 }
 0x3d7   :  { %v774_v4 = vsub.f32 %v2191_v15, %v750_v44 }
 0x3d8   :  { %v1060_v47 = vsel %vm714_vm1, %v1055_v43, 0 }
 0x3d9   :  { %v1762_v40 = vpop.eup %1761  ;;  %v801_v49 = vmul.f32 1.442695, %v774_v4  ;;  %1069 = vmatpush.bf16.xpose.msrb.mxu0 %v1060_v47 }
 0x3da   :  { %v442_v45 = vpop.trf.xlu1  ;;  %v872_v53 = vpack.c.bf16 %v1762_v40, %v1762_v40  ;;  %v826_v10 = vsel %vm714_vm1, %v1762_v40, 0.0 }
 0x3db   :  { %1763 = vpow2.f32 %v801_v49  ;;  %842 = vadd.xlane.f32.xlu2 %v841_v51  ;;  %v861_v1 = vpack.c.bf16 %v442_v45, %v442_v45 }
 0x3dc   :  { %v934_v39 = vunpack.c.l.b16 %v872_v53 }
 0x3de   :  { %v753_v55 = vpop.xlane.xlu0 %752  ;;  %v935_v56 = vpack.c.b16 %v934_v39, %v933_v63 }
 0x3df   :  { %v775_v57 = vsub.f32 %v2196_v11, %v753_v55 }
 0x3e0   :  { %v940_v15 = vsel %vm714_vm1, %v935_v56, 0 }
 0x3e1   :  { %v1764_v3 = vpop.eup %1763  ;;  %949 = vmatpush.bf16.xpose.msrb.mxu3 %v940_v15  ;;  %v803_v62 = vmul.f32 1.442695, %v775_v57 }
 0x3e2   :  { %v443_v29 = vpop.trf.xlu1  ;;  %v878_v61 = vpack.c.bf16 %v1764_v3, %v1764_v3  ;;  %v844_v21 = vsel %vm714_vm1, %v1764_v3, 0.0 }
 0x3e3   :  { %v862_v0 = vpack.c.bf16 %v443_v29, %v443_v29  ;;  %857 = vadd.xlane.f32.xlu2 %v856_v60  ;;  %1765 = vpow2.f32 %v803_v62 }
 0x3e4   :  { %v1006_v2 = vunpack.c.l.b16 %v878_v61 }
 0x3e5   :  { %1626 = vmatmul.msk.bf16.vlgmr.msra.gmra.mxu0 %vm714_vm1, %v862_v0 }
 0x3e6   :  { %v756_v6 = vpop.xlane.xlu0 %755  ;;  %v1007_v7 = vpack.c.b16 %v1006_v2, %v1005_v50 }
 0x3e7   :  { %v776_v11 = vsub.f32 %v2200_v13, %v756_v6 }
 0x3e8   :  { %1625 = vmatmul.msk.bf16.vlgmr.msrb.gmra.mxu3 %vm714_vm1, %v861_v1  ;;  %v1012_v8 = vsel %vm714_vm1, %v1007_v7, 0 }
 0x3e9   :  { %v805_v9 = vmul.f32 1.442695, %v776_v11  ;;  %1021 = vmatpush.bf16.xpose.msrb.mxu2 %v1012_v8  ;;  %v1766_v16 = vpop.eup %1765 }
 0x3ea   :  { %v879_v17 = vpack.c.bf16 %v1766_v16, %v1766_v16  ;;  %v847_v25 = vsel %vm714_vm1, %v1766_v16, 0.0 }
 0x3eb   :  { %1767 = vpow2.f32 %v805_v9  ;;  %827 = vadd.xlane.f32.xlu2 %v826_v10 }
 0x3ec   :  { %v1029_v12 = vunpack.c.l.b16 %v879_v17  ;;  %1769 = vrcp.f32 %v816_v28 }
 0x3ed   :  { %1771 = vrcp.f32 %v813_v27 }
 0x3f1   :  { %v1768_v18 = vpop.eup %1767 }
 0x3f2   :  { %v880_v22 = vpack.c.bf16 %v1768_v18, %v1768_v18  ;;  %v850_v26 = vsel %vm714_vm1, %v1768_v18, 0.0  ;;  %v1770_v35 = vpop.eup %1769 }
 0x3f3   :  { %845 = vadd.xlane.f32.xlu2 %v844_v21  ;;  %v1772_v36 = vpop.eup %1771  ;;  %v1111_v20 = vperm.slane %v1770_v35, %v2254_v34 }
 0x3f4   :  { %v1030_v23 = vunpack.c.l.b16 %v880_v22  ;;  %v1109_v37 = vperm.slane %v1772_v36, %v2251_v33 }
 0x3f6   :  { %v1031_v13 = vpack.c.b16 %v1030_v23, %v1029_v12  ;;  %v1113_v41 = vsel %vm1112_vm2, %v1111_v20, %v1109_v37 }
 0x3f8   :  { %v1036_v24 = vsel %vm714_vm1, %v1031_v13, 0 }
 0x3f9   :  { %1045 = vmatpush.bf16.xpose.msra.mxu3 %v1036_v24 }
 0x3fb   :  { %848 = vadd.xlane.f32.xlu2 %v847_v25 }
 0x403   :  { %851 = vadd.xlane.f32.xlu2 %v850_v26 }
 0x416   :  { %v831_v4 = vpop.xlane.xlu1 %830 }
 0x41e   :  { %v819_v5 = vpop.xlane.xlu2 %818 }
 0x425   :  { %821 = vadd.xlane.f32.xlu0 %v820_v52 }
 0x426   :  { %v834_v43 = vpop.xlane.xlu2 %833 }
 0x427   :  { %1773 = vrcp.f32 %v834_v43 }
 0x428   :  { %1775 = vrcp.f32 %v831_v4 }
 0x429   :  { %1777 = vrcp.f32 %v819_v5 }
 0x42d   :  { %v1774_v40 = vpop.eup %1773 }
 0x42e   :  { %v1776_v49 = vpop.eup %1775  ;;  %v837_v45 = vpop.xlane.xlu2 %836  ;;  %v1121_v51 = vperm.slane %v1774_v40, %v2254_v34 }
 0x42f   :  { %v1120_v53 = vperm.slane %v1776_v49, %v2251_v33  ;;  %v1778_v2 = vpop.eup %1777 }
 0x430   :  { %v1114_v7 = vperm.slane %v1778_v2, %v2251_v33 }
 0x431   :  { %v1122_v39 = vsel %vm1112_vm2, %v1121_v51, %v1120_v53 }
 0x436   :  { %v840_v56 = vpop.xlane.xlu2 %839 }
 0x43e   :  { %v855_v58 = vpop.xlane.xlu2 %854 }
 0x440   :  { %v472_v32 = vpop.trf.xlu0 }
 0x441   :  { %v863_v19 = vpack.c.bf16 %v472_v32, %v472_v32 }
 0x443   :  { %1627 = vmatmul.msk.bf16.vlgmr.msrb.gmra.mxu1 %vm714_vm1, %v863_v19 }
 0x446   :  { %v825_v60 = vpop.xlane.xlu2 %824 }
 0x448   :  { %v473_v59 = vpop.trf.xlu0 }
 0x449   :  { %v864_v54 = vpack.c.bf16 %v473_v59, %v473_v59 }
 0x44a   :  { %v903_v38 = vpop.f32.mrf.mxu1 }
 0x44b   :  { %v1197_v42 = vmul.f32 %v1113_v41, %v903_v38  ;;  %1628 = vmatmul.msk.bf16.vlgmr.msrb.gmra.mxu2 %vm714_vm1, %v864_v54 }
 0x44d   :  { %1205 = vxpose.xlu2.b32.start [1/4] (short) (narrow) %v1197_v42, 16 }
 0x44e   :  { %v843_v62 = vpop.xlane.xlu2 %842 }
 0x450   :  { %v474_v30 = vpop.trf.xlu0 }
 0x451   :  { %v865_v44 = vpack.c.bf16 %v474_v30, %v474_v30 }
 0x452   :  { %v905_v46 = vpop.f32.mrf.mxu1 }
 0x453   :  { %1629 = vmatmul.msk.bf16.vlgmr.msra.gmra.mxu3 %vm714_vm1, %v865_v44 }
 0x456   :  { %v858_v0 = vpop.xlane.xlu2 %857 }
 0x458   :  { %v475_v47 = vpop.trf.xlu0  ;;  %v927_v29 = vpop.f32.mrf.mxu2 }
 0x459   :  { %v866_v48 = vpack.c.bf16 %v475_v47, %v475_v47 }
 0x45b   :  { %1630 = vmatmul.msk.bf16.vlgmr.msrb.gmra.mxu0 %vm714_vm1, %v866_v48 }
 0x45e   :  { %v828_v50 = vpop.xlane.xlu2 %827 }
 0x460   :  { %v929_v61 = vpop.f32.mrf.mxu2 }
 0x462   :  { %v975_v63 = vpop.f32.mrf.mxu0 }
 0x463   :  { %v1200_v55 = vmul.f32 %v1122_v39, %v975_v63  ;;  %v1676_v39 = vld [vmem:[#allocation5 + $0x8] sm:$0xff] }
 0x464   :  { %1300 = vmatpush.bf16.msra.mxu1 %v1676_v39 }
 0x466   :  { %v846_v12 = vpop.xlane.xlu2 %845 }
 0x46a   :  { %v977_v57 = vpop.f32.mrf.mxu0 }
 0x46b   :  { %v951_v15 = vpop.f32.mrf.mxu3 }
 0x46e   :  { %v849_v24 = vpop.xlane.xlu2 %848 }
 0x473   :  { %v953_v3 = vpop.f32.mrf.mxu3 }
 0x476   :  { %v852_v31 = vpop.xlane.xlu2 %851 }
 0x498   :  { %v822_v1 = vpop.xlane.xlu0 %821 }
 0x499   :  { %1779 = vrcp.f32 %v822_v1 }
 0x49a   :  { %1781 = vrcp.f32 %v828_v50 }
 0x49b   :  { %1783 = vrcp.f32 %v825_v60 }
 0x49c   :  { %1785 = vrcp.f32 %v840_v56 }
 0x49d   :  { %1787 = vrcp.f32 %v837_v45 }
 0x49e   :  { %1789 = vrcp.f32 %v846_v12 }
 0x49f   :  { %v1780_v6 = vpop.eup %1779  ;;  %1791 = vrcp.f32 %v843_v62  ;;  %v1818_v62 = vld [vmem:[#allocation2] sm:$0xff] }
 0x4a0   :  { %v1115_v11 = vperm.slane %v1780_v6, %v2254_v34  ;;  %v1782_v9 = vpop.eup %1781  ;;  %1793 = vrcp.f32 %v852_v31  ;;  %v1819_v6 = vld [vmem:[#allocation2 + $0x8] sm:$0xff] }
 0x4a1   :  { %v1784_v16 = vpop.eup %1783  ;;  %v1118_v17 = vperm.slane %v1782_v9, %v2254_v34  ;;  %1795 = vrcp.f32 %v849_v24 }
 0x4a2   :  { %v1116_v8 = vsel %vm1112_vm2, %v1115_v11, %v1114_v7  ;;  %v1117_v18 = vperm.slane %v1784_v16, %v2251_v33  ;;  %v1786_v23 = vpop.eup %1785  ;;  %1797 = vrcp.f32 %v858_v0 }
 0x4a3   :  { %v1198_v10 = vmul.f32 %v1116_v8, %v927_v29  ;;  %v1788_v13 = vpop.eup %1787  ;;  %v1124_v25 = vperm.slane %v1786_v23, %v2254_v34  ;;  %1799 = vrcp.f32 %v855_v58 }
 0x4a4   :  { %v1119_v21 = vsel %vm1112_vm2, %v1118_v17, %v1117_v18  ;;  %v1123_v26 = vperm.slane %v1788_v13, %v2251_v33  ;;  %v1790_v32 = vpop.eup %1789 }
 0x4a5   :  { %1206 = vxpose.xlu2.b32.cont [2/4] (short) (narrow) %v1198_v10, 16  ;;  %v1199_v22 = vmul.f32 %v1119_v21, %v951_v15  ;;  %v1792_v35 = vpop.eup %1791  ;;  %v1127_v36 = vperm.slane %v1790_v32, %v2254_v34  ;;  %v1820_v10 = vld [vmem:[#allocation2 + $0x10] sm:$0xff] }
 0x4a6   :  { %v1125_v27 = vsel %vm1112_vm2, %v1124_v25, %v1123_v26  ;;  %v1126_v20 = vperm.slane %v1792_v35, %v2251_v33  ;;  %v1794_v37 = vpop.eup %1793 }
 0x4a7   :  { %v1796_v38 = vpop.eup %1795  ;;  %v1130_v41 = vperm.slane %v1794_v37, %v2254_v34 }
 0x4a8   :  { %v1128_v59 = vsel %vm1112_vm2, %v1127_v36, %v1126_v20  ;;  %v1129_v42 = vperm.slane %v1796_v38, %v2251_v33  ;;  %v1798_v46 = vpop.eup %1797 }
 0x4a9   :  { %v1800_v48 = vpop.eup %1799  ;;  %v1133_v40 = vperm.slane %v1798_v46, %v2254_v34 }
 0x4aa   :  { %v1131_v44 = vsel %vm1112_vm2, %v1130_v41, %v1129_v42  ;;  %v1132_v49 = vperm.slane %v1800_v48, %v2251_v33  ;;  %v2286_v33 = vld [vmem:[#allocation8] sm:$0xff] }
 0x4ab   :  { %v1275_v29 = vperm.slane %v2286_v33, 7 }
 0x4ac   :  { %v1134_v45 = vsel %vm1112_vm2, %v1133_v40, %v1132_v49 }
 0x4ad   :  { %1207 = vxpose.xlu2.b32.cont [3/4] (short) (narrow) %v1199_v22, 16  ;;  %v1821_v22 = vld [vmem:[#allocation2 + $0x18] sm:$0xff] }
 0x4b5   :  { %1208 = vxpose.xlu2.b32.end [4/4] (short) (narrow) %v1200_v55, 16  ;;  %v1675_v55 = vld [vmem:[#allocation5] sm:$0xff] }
 0x4b6   :  { %1301 = vmatpush.bf16.msra.mxu1 %v1675_v55 }
 0x4c0   :  { %v999_v52 = vpop.f32.mrf.mxu1 }
 0x4c1   :  { %v1201_v28 = vmul.f32 %v1125_v27, %v999_v52 }
 0x4c3   :  { %1237 = vxpose.xlu1.b32.start [1/4] (short) (narrow) %v1201_v28, 16 }
 0x4c8   :  { %v1001_v19 = vpop.f32.mrf.mxu1 }
 0x4ce   :  { %v1023_v5 = vpop.f32.mrf.mxu2 }
 0x4cf   :  { %v1202_v54 = vmul.f32 %v1128_v59, %v1023_v5 }
 0x4d1   :  { %1238 = vxpose.xlu1.b32.cont [2/4] (short) (narrow) %v1202_v54, 16 }
 0x4d6   :  { %v1047_v30 = vpop.f32.mrf.mxu3  ;;  %v1025_v43 = vpop.f32.mrf.mxu2 }
 0x4d7   :  { %v1203_v4 = vmul.f32 %v1131_v44, %v1047_v30  ;;  %v1678_v30 = vld [vmem:[#allocation7 + $0x8] sm:$0xff] }
 0x4d8   :  { %v1071_v47 = vpop.f32.mrf.mxu0  ;;  %1446 = vmatpush.bf16.msra.mxu2 %v1678_v30  ;;  %v1682_v30 = vld [vmem:[%s2367_s4 + $0x18] sm:$0xff] }
 0x4d9   :  { %1239 = vxpose.xlu1.b32.cont [3/4] (short) (narrow) %v1203_v4, 16  ;;  %v1204_v53 = vmul.f32 %v1134_v45, %v1071_v47  ;;  %v1677_v4 = vld [vmem:[#allocation7] sm:$0xff]  ;;  %1541 = vmatpush.bf16.msrb.mxu3 %v1682_v30 }
 0x4dc   :  { %1447 = vmatpush.bf16.msra.mxu2 %v1677_v4 }
 0x4de   :  { %v1049_v51 = vpop.f32.mrf.mxu3 }
 0x4e0   :  { %v1073_v63 = vpop.f32.mrf.mxu0 }
 0x4e1   :  { %1240 = vxpose.xlu1.b32.end [4/4] (short) (narrow) %v1204_v53, 16 }
 0x536   :  { %v1221_v56 = vpop.trf.xlu2 }
 0x53e   :  { %v1222_v57 = vpop.trf.xlu2 }
 0x53f   :  { %v1269_v15 = vpack.c.bf16 %v1222_v57, %v1221_v56 }
 0x541   :  { %1639 = vmatmul.msk.bf16.vlgmr.msra.gmra.mxu1 %vm94_vm0, %v1269_v15 }
 0x56d   :  { %v1253_v58 = vpop.trf.xlu1 }
 0x575   :  { %v1254_v3 = vpop.trf.xlu1 }
 0x576   :  { %v1270_v34 = vpack.c.bf16 %v1254_v3, %v1253_v58 }
 0x578   :  { %1640 = vmatmul.msk.bf16.gmra.mxu1 %vm94_vm0, %v1270_v34  ;;  %v1405_v34 = vperm.slane %v2286_v33, 2 }
 0x5be   :  { %v1303_v60 = vpop.f32.mrf.mxu1 }
 0x5bf   :  { %v1304_v61 = vadd.f32 %v1303_v60, %v1275_v29 }
 0x5c1   :  { %v2289_v0 = vadd.f32 %v1818_v62, %v1304_v61  ;;  %v1410_v62 = vperm.slane %v2286_v33, 3 }
 0x5c3   :  { %v1317_v1 = vsel %vm94_vm0, %v2289_v0, 0.0 }
 0x5c4   :  { %1318 = vadd.xlane.f32.xlu0 %v1317_v1 }
 0x5c6   :  { %v1305_v50 = vpop.f32.mrf.mxu1 }
 0x5c7   :  { %v1306_v2 = vadd.f32 %v1305_v50, %v1275_v29 }
 0x5c9   :  { %v2293_v7 = vadd.f32 %v1819_v6, %v1306_v2 }
 0x5cb   :  { %v1320_v11 = vsel %vm94_vm0, %v2293_v7, 0.0 }
 0x5cc   :  { %1321 = vadd.xlane.f32.xlu0 %v1320_v11 }
 0x5f5   :  { %v1308_v8 = vpop.f32.mrf.mxu1 }
 0x5f6   :  { %v1309_v9 = vadd.f32 %v1308_v8, %v1275_v29 }
 0x5f8   :  { %v2297_v16 = vadd.f32 %v1820_v10, %v1309_v9 }
 0x5fa   :  { %v1323_v17 = vsel %vm94_vm0, %v2297_v16, 0.0 }
 0x5fb   :  { %1324 = vadd.xlane.f32.xlu0 %v1323_v17 }
 0x5fd   :  { %v1310_v18 = vpop.f32.mrf.mxu1 }
 0x5fe   :  { %v1311_v21 = vadd.f32 %v1310_v18, %v1275_v29 }
 0x600   :  { %v2301_v12 = vadd.f32 %v1821_v22, %v1311_v21 }
 0x602   :  { %v1326_v23 = vsel %vm94_vm0, %v2301_v12, 0.0 }
 0x603   :  { %1327 = vadd.xlane.f32.xlu0 %v1326_v23 }
 0x637   :  { %v1319_v13 = vpop.xlane.xlu0 %1318 }
 0x638   :  { %v1329_v24 = vmul.f32 %v1319_v13, %v2020_v14 }
 0x63a   :  { %v1333_v25 = vsub.f32 %v2289_v0, %v1329_v24 }
 0x63c   :  { %v1337_v26 = vmul.f32 %v1333_v25, %v1333_v25 }
 0x63e   :  { %v1341_v52 = vsel %vm94_vm0, %v1337_v26, 0.0 }
 0x63f   :  { %1342 = vadd.xlane.f32.xlu2 %v1341_v52  ;;  %v1322_v27 = vpop.xlane.xlu0 %1321 }
 0x640   :  { %v1330_v28 = vmul.f32 %v1322_v27, %v2020_v14 }
 0x642   :  { %v1334_v31 = vsub.f32 %v2293_v7, %v1330_v28 }
 0x644   :  { %v1338_v32 = vmul.f32 %v1334_v31, %v1334_v31 }
 0x646   :  { %v1344_v19 = vsel %vm94_vm0, %v1338_v32, 0.0 }
 0x647   :  { %1345 = vadd.xlane.f32.xlu0 %v1344_v19 }
 0x66e   :  { %v1325_v35 = vpop.xlane.xlu0 %1324 }
 0x66f   :  { %v1331_v36 = vmul.f32 %v1325_v35, %v2020_v14 }
 0x671   :  { %v2313_v20 = vsub.f32 %v2297_v16, %v1331_v36 }
 0x673   :  { %v1339_v5 = vmul.f32 %v2313_v20, %v2313_v20 }
 0x675   :  { %v1347_v59 = vsel %vm94_vm0, %v1339_v5, 0.0 }
 0x676   :  { %1348 = vadd.xlane.f32.xlu0 %v1347_v59  ;;  %v1328_v37 = vpop.xlane.xlu0 %1327 }
 0x677   :  { %v1332_v54 = vmul.f32 %v1328_v37, %v2020_v14 }
 0x679   :  { %v2320_v38 = vsub.f32 %v2301_v12, %v1332_v54 }
 0x67b   :  { %v1340_v41 = vmul.f32 %v2320_v38, %v2320_v38 }
 0x67d   :  { %v1350_v42 = vsel %vm94_vm0, %v1340_v41, 0.0 }
 0x67e   :  { %1351 = vadd.xlane.f32.xlu0 %v1350_v42 }
 0x6b2   :  { %v1343_v44 = vpop.xlane.xlu2 %1342 }
 0x6b3   :  { %v1353_v43 = vmul.f32 %v1343_v44, %v2020_v14  ;;  %v89_v44 = vld [vmem:[#allocation8 + $0x8] sm:$0xff] }
 0x6b5   :  { %v1357_v46 = vadd.f32 1e-06, %v1353_v43  ;;  %v1679_v43 = vld [vmem:[%s2367_s4] sm:$0xff] }
 0x6b7   :  { %1801 = vrsqrt.f32 %v1357_v46  ;;  %vm1367_vm4 = vweird.f32 %v1357_v46 }
 0x6ba   :  { %v1346_v47 = vpop.xlane.xlu0 %1345 }
 0x6bb   :  { %v1354_v48 = vmul.f32 %v1346_v47, %v2020_v14 }
 0x6bd   :  { %v1802_v40 = vpop.eup %1801  ;;  %v1358_v49 = vadd.f32 1e-06, %v1354_v48 }
 0x6be   :  { %v1362_v45 = vmul.f32 %v1802_v40, %v1357_v46  ;;  %vm1368_vm3 = vweird.f32 %v1802_v40  ;;  %v1421_v46 = vperm.slane %v89_v44, 0 }
 0x6bf   :  { %1803 = vrsqrt.f32 %v1358_v49  ;;  %vm1369_vm5 = vmor %vm1367_vm4, %vm1368_vm3  ;;  %vm1377_vm7 = vweird.f32 %v1358_v49 }
 0x6c0   :  { %v1363_v51 = vmul.f32 %v1802_v40, %v1362_v45 }
 0x6c2   :  { %v1364_v53 = vmul.f32 0.5, %v1363_v51 }
 0x6c4   :  { %v1365_v63 = vsub.f32 1.5, %v1364_v53 }
 0x6c5   :  { %v1804_v39 = vpop.eup %1803 }
 0x6c6   :  { %v1366_v55 = vmul.f32 %v1802_v40, %v1365_v63  ;;  %v1372_v56 = vmul.f32 %v1804_v39, %v1358_v49  ;;  %vm1378_vm6 = vweird.f32 %v1804_v39 }
 0x6c7   :  { %vm1379_vm8 = vmor %vm1377_vm7, %vm1378_vm6 }
 0x6c8   :  { %v1373_v57 = vmul.f32 %v1804_v39, %v1372_v56  ;;  %v1370_v15 = vsel %vm1369_vm5, %v1802_v40, %v1366_v55 }
 0x6c9   :  { %v1401_v29 = vmul.f32 %v1370_v15, %v1333_v25 }
 0x6ca   :  { %v1374_v58 = vmul.f32 0.5, %v1373_v57 }
 0x6cb   :  { %v1406_v1 = vmul.f32 %v1405_v34, %v1401_v29 }
 0x6cc   :  { %v1375_v3 = vsub.f32 1.5, %v1374_v58 }
 0x6cd   :  { %v1411_v6 = vadd.f32 %v1410_v62, %v1406_v1 }
 0x6ce   :  { %v1376_v60 = vmul.f32 %v1804_v39, %v1375_v3 }
 0x6d0   :  { %v1380_v61 = vsel %vm1379_vm8, %v1804_v39, %v1376_v60 }
 0x6d1   :  { %v1402_v50 = vmul.f32 %v1380_v61, %v1334_v31 }
 0x6d3   :  { %v1407_v2 = vmul.f32 %v1405_v34, %v1402_v50 }
 0x6d5   :  { %v1412_v11 = vadd.f32 %v1410_v62, %v1407_v2 }
 0x6d7   :  { %v1415_v8 = vpack.c.bf16 %v1412_v11, %v1411_v6 }
 0x6d9   :  { %1649 = vmatmul.msk.bf16.vlgmr.msra.gmra.mxu2 %vm94_vm0, %v1415_v8 }
 0x6e9   :  { %v1349_v9 = vpop.xlane.xlu0 %1348 }
 0x6ea   :  { %v1355_v10 = vmul.f32 %v1349_v9, %v2020_v14 }
 0x6ec   :  { %v1359_v17 = vadd.f32 1e-06, %v1355_v10 }
 0x6ee   :  { %1805 = vrsqrt.f32 %v1359_v17  ;;  %vm1387_vm10 = vweird.f32 %v1359_v17 }
 0x6f1   :  { %v1352_v18 = vpop.xlane.xlu0 %1351 }
 0x6f2   :  { %v1356_v21 = vmul.f32 %v1352_v18, %v2020_v14 }
 0x6f4   :  { %v1806_v22 = vpop.eup %1805  ;;  %v1360_v23 = vadd.f32 1e-06, %v1356_v21 }
 0x6f5   :  { %v1382_v13 = vmul.f32 %v1806_v22, %v1359_v17  ;;  %vm1388_vm9 = vweird.f32 %v1806_v22 }
 0x6f6   :  { %1807 = vrsqrt.f32 %v1360_v23  ;;  %vm1389_vm11 = vmor %vm1387_vm10, %vm1388_vm9  ;;  %vm1397_vm13 = vweird.f32 %v1360_v23 }
 0x6f7   :  { %v1383_v33 = vmul.f32 %v1806_v22, %v1382_v13 }
 0x6f9   :  { %v1384_v24 = vmul.f32 0.5, %v1383_v33 }
 0x6fb   :  { %v1385_v25 = vsub.f32 1.5, %v1384_v24 }
 0x6fc   :  { %v1808_v26 = vpop.eup %1807 }
 0x6fd   :  { %v1386_v52 = vmul.f32 %v1806_v22, %v1385_v25  ;;  %v1392_v27 = vmul.f32 %v1808_v26, %v1360_v23  ;;  %vm1398_vm12 = vweird.f32 %v1808_v26 }
 0x6fe   :  { %vm1399_vm14 = vmor %vm1397_vm13, %vm1398_vm12 }
 0x6ff   :  { %v1393_v28 = vmul.f32 %v1808_v26, %v1392_v27  ;;  %v1390_v31 = vsel %vm1389_vm11, %v1806_v22, %v1386_v52 }
 0x700   :  { %v1403_v14 = vmul.f32 %v1390_v31, %v2313_v20  ;;  %v1681_v20 = vld [vmem:[%s2367_s4 + $0x10] sm:$0xff] }
 0x701   :  { %v1394_v32 = vmul.f32 0.5, %v1393_v28  ;;  %1542 = vmatpush.bf16.msrb.mxu3 %v1681_v20 }
 0x702   :  { %v1408_v59 = vmul.f32 %v1405_v34, %v1403_v14 }
 0x703   :  { %v1395_v19 = vsub.f32 1.5, %v1394_v32 }
 0x704   :  { %v1413_v54 = vadd.f32 %v1410_v62, %v1408_v59 }
 0x705   :  { %v1396_v35 = vmul.f32 %v1808_v26, %v1395_v19 }
 0x707   :  { %v1400_v36 = vsel %vm1399_vm14, %v1808_v26, %v1396_v35  ;;  %v1505_v35 = vperm.slane %v89_v44, 1 }
 0x708   :  { %v1404_v5 = vmul.f32 %v1400_v36, %v2320_v38  ;;  %v1680_v38 = vld [vmem:[%s2367_s4 + $0x8] sm:$0xff]  ;;  %s1962_s4 = smov [#allocation10]  }
 0x709   :  { %1543 = vmatpush.bf16.msrb.mxu3 %v1680_v38  ;;  %s1568_s25 = sshll.u32 %s1962_s4, 4  ;;  %s1569_s25 = int_to_ptr.vmem [resolvable:$true] %s1568_s25 }
 0x70a   :  { %v1409_v37 = vmul.f32 %v1405_v34, %v1404_v5 }
 0x70c   :  { %v1414_v41 = vadd.f32 %v1410_v62, %v1409_v37 }
 0x70d   :  { %1544 = vmatpush.bf16.msrb.mxu3 %v1679_v43 }
 0x70e   :  { %v1416_v42 = vpack.c.bf16 %v1414_v41, %v1413_v54 }
 0x710   :  { %1650 = vmatmul.msk.bf16.gmra.mxu2 %vm94_vm0, %v1416_v42 }
 0x75c   :  { %v1449_v4 = vpop.f32.mrf.mxu2 }
 0x75d   :  { %v1450_v47 = vadd.f32 %v1449_v4, %v1421_v46 }
 0x75f   :  { %v1463_v48 = vmul.f32 0.044715, %v1450_v47  ;;  %v1459_v29 = vmul.f32 0.5, %v1450_v47 }
 0x761   :  { %v1467_v40 = vmul.f32 %v1463_v48, %v1450_v47 }
 0x763   :  { %v1471_v49 = vmul.f32 %v1467_v40, %v1450_v47 }
 0x764   :  { %v1451_v45 = vpop.f32.mrf.mxu2 }
 0x765   :  { %v1475_v51 = vadd.f32 %v1471_v49, %v1450_v47  ;;  %v1452_v53 = vadd.f32 %v1451_v45, %v1421_v46 }
 0x767   :  { %v1464_v63 = vmul.f32 0.044715, %v1452_v53  ;;  %v1479_v39 = vmul.f32 0.7978846, %v1475_v51  ;;  %v1460_v60 = vmul.f32 0.5, %v1452_v53 }
 0x769   :  { %v1468_v55 = vmul.f32 %v1464_v63, %v1452_v53  ;;  %1809 = vtanh.f32 %v1479_v39 }
 0x76b   :  { %v1472_v56 = vmul.f32 %v1468_v55, %v1452_v53 }
 0x76d   :  { %v1476_v57 = vadd.f32 %v1472_v56, %v1452_v53 }
 0x76f   :  { %v1480_v15 = vmul.f32 0.7978846, %v1476_v57  ;;  %v1810_v58 = vpop.eup %1809 }
 0x770   :  { %v1487_v3 = vadd.f32 1.0, %v1810_v58 }
 0x771   :  { %1811 = vtanh.f32 %v1480_v15 }
 0x772   :  { %v1491_v62 = vmul.f32 %v1487_v3, %v1459_v29 }
 0x777   :  { %v1812_v34 = vpop.eup %1811 }
 0x778   :  { %v1488_v61 = vadd.f32 1.0, %v1812_v34 }
 0x77a   :  { %v1492_v1 = vmul.f32 %v1488_v61, %v1460_v60 }
 0x77c   :  { %v1495_v50 = vpack.c.bf16 %v1492_v1, %v1491_v62 }
 0x77e   :  { %1667 = vmatmul.msk.bf16.vlgmr.msrb.gmra.mxu3 %vm1530_vm15, %v1495_v50 }
 0x793   :  { %v1454_v2 = vpop.f32.mrf.mxu2 }
 0x794   :  { %v1455_v6 = vadd.f32 %v1454_v2, %v1421_v46 }
 0x796   :  { %v1465_v11 = vmul.f32 0.044715, %v1455_v6  ;;  %v1461_v27 = vmul.f32 0.5, %v1455_v6 }
 0x798   :  { %v1469_v8 = vmul.f32 %v1465_v11, %v1455_v6 }
 0x79a   :  { %v1473_v9 = vmul.f32 %v1469_v8, %v1455_v6 }
 0x79b   :  { %v1456_v10 = vpop.f32.mrf.mxu2 }
 0x79c   :  { %v1457_v17 = vadd.f32 %v1456_v10, %v1421_v46  ;;  %v1477_v18 = vadd.f32 %v1473_v9, %v1455_v6 }
 0x79e   :  { %v1466_v21 = vmul.f32 0.044715, %v1457_v17  ;;  %v1481_v23 = vmul.f32 0.7978846, %v1477_v18  ;;  %v1462_v28 = vmul.f32 0.5, %v1457_v17 }
 0x7a0   :  { %v1470_v22 = vmul.f32 %v1466_v21, %v1457_v17  ;;  %1813 = vtanh.f32 %v1481_v23 }
 0x7a2   :  { %v1474_v13 = vmul.f32 %v1470_v22, %v1457_v17 }
 0x7a4   :  { %v1478_v33 = vadd.f32 %v1474_v13, %v1457_v17 }
 0x7a6   :  { %v1482_v24 = vmul.f32 0.7978846, %v1478_v33  ;;  %v1814_v25 = vpop.eup %1813 }
 0x7a7   :  { %v1489_v26 = vadd.f32 1.0, %v1814_v25 }
 0x7a8   :  { %1815 = vtanh.f32 %v1482_v24 }
 0x7a9   :  { %v1493_v32 = vmul.f32 %v1489_v26, %v1461_v27 }
 0x7ae   :  { %v1816_v52 = vpop.eup %1815 }
 0x7af   :  { %v1490_v31 = vadd.f32 1.0, %v1816_v52 }
 0x7b1   :  { %v1494_v19 = vmul.f32 %v1490_v31, %v1462_v28 }
 0x7b3   :  { %v1496_v14 = vpack.c.bf16 %v1494_v19, %v1493_v32 }
 0x7b5   :  { %1668 = vmatmul.msk.bf16.gmra.mxu3 %vm1530_vm15, %v1496_v14 }
 0x801   :  { %v1546_v36 = vpop.f32.mrf.mxu3 }
 0x802   :  { %v1547_v5 = vadd.f32 %v1546_v36, %v1505_v35 }
 0x804   :  { %v1556_v59 = vadd.f32 %v1547_v5, %v2289_v0 }
 0x806   :  { %1560 = vst.msk [vmem:[#allocation10] sm:$0xff] %vm94_vm0, %v1556_v59 }
 0x809   :  { %v1548_v37 = vpop.f32.mrf.mxu3 }
 0x80a   :  { %v1549_v54 = vadd.f32 %v1548_v37, %v1505_v35 }
 0x80c   :  { %v1557_v41 = vadd.f32 %v1549_v54, %v2293_v7 }
 0x80e   :  { %1561 = vst.msk [vmem:[#allocation10 + $0x8] sm:$0xff] %vm94_vm0, %v1557_v41 }
 0x838   :  { %v1551_v42 = vpop.f32.mrf.mxu3 }
 0x839   :  { %v1552_v30 = vadd.f32 %v1551_v42, %v1505_v35 }
 0x83b   :  { %v1558_v20 = vadd.f32 %v1552_v30, %v2297_v16 }
 0x83d   :  { %1562 = vst.msk [vmem:[#allocation10 + $0x10] sm:$0xff] %vm94_vm0, %v1558_v20 }
 0x840   :  { %v1553_v38 = vpop.f32.mrf.mxu3 }
 0x841   :  { %v1554_v0 = vadd.f32 %v1553_v38, %v1505_v35 }
 0x843   :  { %v1559_v44 = vadd.f32 %v1554_v0, %v2301_v12 }
 0x845   :  { %1563 = vst.msk [vmem:[#allocation10 + $0x18] sm:$0xff] %vm94_vm0, %v1559_v44 }
 0x846   :  { %1576 = dma.vmem_to_hbm [thread:$0]  %s1569_s25, 512, %s1571_s28, [#allocation4], %s1954_s9, %s1954_s9, %s1955_s10  }
 0x847   :  { %1948 = dma.done.wait [#allocation4], 512  }
 0x848   :  { %1949 = vsyncadd [#allocation4], 4294966784 }
 0x849   :  { %1581 = vsyncpa [#allocation3], 1 }
 0x84a   :  { %1582 = vsyncpa [#allocation6], 1 }
 0x84b   :  { %1583 = vsyncpa [#allocation9], 1 }
 0x84c   :  { %1584 = vsyncpa [#allocation4], 1 }

</bundles_post_ra>
